<compile_context>
chip_gen: v5e
topology: v5e:2x2
jax: 0.10.0
libtpu: 0.0.40
codegen_flags: <defaults>
</compile_context>

<pallas_src>
import functools

import jax
import jax.numpy as jnp
from jax.experimental import pallas as pl
from jax.experimental.pallas import tpu as pltpu

IN_FEATURES = 784
HIDDEN = 512
NUM_CLASSES = 10
NOUT_PAD = 128   # lane-dense logits/output width (10 real + 118 padded classes)


def _round_up(n, m):
    return (n + m - 1) // m * m


def mlp_kernel(x_ref, w1_ref, b1_ref, w2_ref, b2_ref, o_ref):
    # x_ref : (tb, 784) f32      w1_ref: (784, 512) bf16   b1_ref: (1, 512) f32
    # w2_ref: (512, 128) bf16    b2_ref: (1, 128)  f32     o_ref : (tb, 128) f32

    # Cast folded into the kernel (cheap VPU op, hidden under the MXU matmul).
    x = x_ref[...].astype(jnp.bfloat16)

    # Linear(784, 512): MXU bf16 matmul, f32 accumulate; Tanh in f32 (EUP, v5e-safe).
    h = jnp.dot(x, w1_ref[...], preferred_element_type=jnp.float32)
    h = jnp.tanh(h + b1_ref[...])

    # Linear(512, 10) padded to 128 lane-dense output columns.
    logits = jnp.dot(h.astype(jnp.bfloat16), w2_ref[...],
                     preferred_element_type=jnp.float32) + b2_ref[...]

    # Numerically stable softmax over the class axis.  Padded classes carry a
    # -1e30 bias, so exp(logit - m) == 0 for them and the denominator is the
    # true 10-class sum.
    m = jnp.max(logits, axis=-1, keepdims=True)
    e = jnp.exp(logits - m)
    denom = jnp.sum(e, axis=-1, keepdims=True)
    o_ref[...] = (e * pl.reciprocal(denom, approx=True)).astype(o_ref.dtype)


@functools.partial(jax.jit, static_argnames=("block_b",))
def sequential_model_forward(x_nchw, w1, b1, w2, b2, *, block_b=2048):
    """x_nchw: (B, 1, 28, 28) f32; w1: (784,512); b1: (512,); w2: (512,10); b2: (10,).

    Returns (B, 10) softmax probabilities (f32).
    """
    B = x_nchw.shape[0]
    # nn.Flatten(): contiguous reshape, no HBM copy.  x stays f32; bf16 cast is
    # done inside the kernel so there is no extra wrapper pass over x.
    x_flat = x_nchw.reshape(B, IN_FEATURES).astype(jnp.float32)

    # ---- one-time, tiny weight/bias prep in plain JAX ----
    w1_p = w1.astype(jnp.bfloat16)                                   # (784, 512)
    b1_p = b1.reshape(1, HIDDEN).astype(jnp.float32)                 # (1, 512)
    # Classes 10 -> 128: zero weight columns, -1e30 bias for padded slots.
    w2_p = jnp.pad(w2.astype(jnp.float32),
                   ((0, 0), (0, NOUT_PAD - NUM_CLASSES))).astype(jnp.bfloat16)
    b2_p = jnp.pad(b2.reshape(1, NUM_CLASSES).astype(jnp.float32),
                   ((0, 0), (0, NOUT_PAD - NUM_CLASSES)),
                   constant_values=-1e30)

    # ---- batch tiling ----
    # Balanced tiles (minimal padding); for throughput-sized batches force an even
    # tile count so the "parallel" grid axis splits across v7x's 2 TensorCores.
    n_tiles = -(-B // block_b)
    if B >= 256:
        n_tiles = max(n_tiles, 2)
        n_tiles += n_tiles % 2
    tb = _round_up(B, 8 * n_tiles) // n_tiles      # multiple of 8
    grid = (pl.cdiv(B, tb),)
    rows = grid[0] * tb                            # rows of work (incl. boundary pad)

    # VMEM budget: x tile (f32, x2 buffers) + out tile (x2) + resident weights (x2).
    vmem_need = (2 * tb * IN_FEATURES * 4
                 + 2 * tb * NOUT_PAD * 4
                 + 2 * (IN_FEATURES * HIDDEN * 2 + HIDDEN * NOUT_PAD * 2
                        + HIDDEN * 4 + NOUT_PAD * 4))
    # Give headroom; keep inside v7x's 64 MiB physical VMEM.
    vmem_limit = int(min(max(vmem_need + (8 << 20), 32 << 20), 56 << 20))

    flops = 2 * rows * (IN_FEATURES * HIDDEN + HIDDEN * NOUT_PAD)
    transcendentals = rows * (HIDDEN + NOUT_PAD + 1)      # tanh + exp + rcp
    bytes_accessed = (rows * IN_FEATURES * 4              # x (f32)
                      + IN_FEATURES * HIDDEN * 2          # W1 (bf16)
                      + HIDDEN * NOUT_PAD * 2             # W2 (bf16)
                      + HIDDEN * 4 + NOUT_PAD * 4         # b1, b2 (f32)
                      + B * NOUT_PAD * 4)                 # output (f32)

    out = pl.pallas_call(
        mlp_kernel,
        out_shape=jax.ShapeDtypeStruct((B, NOUT_PAD), jnp.float32),
        grid_spec=pltpu.PrefetchScalarGridSpec(
            num_scalar_prefetch=0,
            grid=grid,
            in_specs=[
                pl.BlockSpec((tb, IN_FEATURES), lambda i: (i, 0)),    # x tile
                pl.BlockSpec((IN_FEATURES, HIDDEN), lambda i: (0, 0)),  # W1 (resident)
                pl.BlockSpec((1, HIDDEN), lambda i: (0, 0)),            # b1 (resident)
                pl.BlockSpec((HIDDEN, NOUT_PAD), lambda i: (0, 0)),     # W2 (resident)
                pl.BlockSpec((1, NOUT_PAD), lambda i: (0, 0)),          # b2 (resident)
            ],
            out_specs=pl.BlockSpec((tb, NOUT_PAD), lambda i: (i, 0)),
        ),
        compiler_params=pltpu.CompilerParams(
            dimension_semantics=("parallel",),   # shard batch tiles across TCs (v7x)
            vmem_limit_bytes=vmem_limit,
        ),
        cost_estimate=pl.CostEstimate(
            flops=flops,
            transcendentals=transcendentals,
            bytes_accessed=bytes_accessed,
        ),
    )(x_flat, w1_p, b1_p, w2_p, b2_p)

    # Strip the 118 padded class columns.
    return out[:, :NUM_CLASSES]


def init_params(key):
    k1, k2, k3, k4 = jax.random.split(key, 4)
    # torch nn.Linear-like uniform(-1/sqrt(fan_in), 1/sqrt(fan_in)) init.
    lim1 = 1.0 / jnp.sqrt(784.0)
    lim2 = 1.0 / jnp.sqrt(512.0)
    w1 = jax.random.uniform(k1, (IN_FEATURES, HIDDEN), jnp.float32, -lim1, lim1)
    b1 = jax.random.uniform(k2, (HIDDEN,), jnp.float32, -lim1, lim1)
    w2 = jax.random.uniform(k3, (HIDDEN, NUM_CLASSES), jnp.float32, -lim2, lim2)
    b2 = jax.random.uniform(k4, (NUM_CLASSES,), jnp.float32, -lim2, lim2)
    return w1, b1, w2, b2


if __name__ == "__main__":
    key = jax.random.PRNGKey(0)
    kx, kp = jax.random.split(key)

    # Small MNIST-like batch (latency-bound demo path; throughput wins apply at
    # large B): (B, C, H, W) = (8, 1, 28, 28) -> flatten to 784.
    B = 8
    x = jax.random.normal(kx, (B, 1, 28, 28), jnp.float32)
    w1, b1, w2, b2 = init_params(kp)

    out = sequential_model_forward(x, w1, b1, w2, b2)
    out = jax.block_until_ready(out)

    # Reference in plain f32 JAX.  Tolerance loosened because the kernel's matmul
    # operands are bf16 (f32 accumulation) and the softmax uses the EUP approximate
    # reciprocal.
    xf = x.reshape(B, -1)
    ref = jax.nn.softmax(jnp.tanh(xf @ w1 + b1) @ w2 + b2, axis=1)

    assert out.shape == (B, NUM_CLASSES)
    assert jnp.allclose(out, ref, atol=2e-2), "mismatch vs reference"
    assert jnp.allclose(jnp.sum(out, axis=1), 1.0, atol=5e-3)

    print("KERNEL_OK")
</pallas_src>

<mosaic_0001>
module attributes {stable_mosaic.version = 11 : i64} {
  func.func @mlp_kernel(%arg0: i32, %arg1: memref<8x784xf32, #tpu.memory_space<vmem>>, %arg2: memref<784x512xbf16, #tpu.memory_space<vmem>>, %arg3: memref<1x512xf32, #tpu.memory_space<vmem>>, %arg4: memref<512x128xbf16, #tpu.memory_space<vmem>>, %arg5: memref<1x128xf32, #tpu.memory_space<vmem>>, %arg6: memref<8x128xf32, #tpu.memory_space<vmem>>) attributes {dimension_semantics = [#tpu.dimension_semantics<parallel>], iteration_bounds = array<i64: 1>, scalar_prefetch = 0 : i64, scratch_operands = 0 : i64, tpu.core_type = #tpu.core_type<tc>, window_params = [{transform_indices = @transform_0, window_bounds = array<i64: 8, 784>}, {pipeline_mode = #tpu.pipeline_mode<synchronous>, transform_indices = @transform_1, window_bounds = array<i64: 784, 512>}, {pipeline_mode = #tpu.pipeline_mode<synchronous>, transform_indices = @transform_2, window_bounds = array<i64: 1, 512>}, {pipeline_mode = #tpu.pipeline_mode<synchronous>, transform_indices = @transform_3, window_bounds = array<i64: 512, 128>}, {pipeline_mode = #tpu.pipeline_mode<synchronous>, transform_indices = @transform_4, window_bounds = array<i64: 1, 128>}, {transform_indices = @transform_5, window_bounds = array<i64: 8, 128>}]} {
    %c0 = arith.constant 0 : index
    %c0_0 = arith.constant 0 : index
    %0 = vector.load %arg1[%c0, %c0_0] : memref<8x784xf32, #tpu.memory_space<vmem>>, vector<8x784xf32>
    %1 = arith.truncf %0 : vector<8x784xf32> to vector<8x784xbf16>
    %c0_1 = arith.constant 0 : index
    %c0_2 = arith.constant 0 : index
    %2 = vector.load %arg2[%c0_1, %c0_2] : memref<784x512xbf16, #tpu.memory_space<vmem>>, vector<784x512xbf16>
    %cst = arith.constant dense<0.000000e+00> : vector<8x512xf32>
    %3 = tpu.matmul %1, %2, %cst {dimension_numbers = #tpu.dot_dimension_numbers<[1], [0], [0], [1], [0, 0, 1, 1], [], []>} : vector<8x784xbf16>, vector<784x512xbf16>, vector<8x512xf32> -> vector<8x512xf32>
    %c0_3 = arith.constant 0 : index
    %c0_4 = arith.constant 0 : index
    %4 = vector.load %arg3[%c0_3, %c0_4] : memref<1x512xf32, #tpu.memory_space<vmem>>, vector<1x512xf32>
    %5 = vector.broadcast %4 : vector<1x512xf32> to vector<8x512xf32>
    %6 = arith.addf %3, %5 : vector<8x512xf32>
    %7 = math.tanh %6 : vector<8x512xf32>
    %8 = arith.truncf %7 : vector<8x512xf32> to vector<8x512xbf16>
    %c0_5 = arith.constant 0 : index
    %c0_6 = arith.constant 0 : index
    %9 = vector.load %arg4[%c0_5, %c0_6] : memref<512x128xbf16, #tpu.memory_space<vmem>>, vector<512x128xbf16>
    %cst_7 = arith.constant dense<0.000000e+00> : vector<8x128xf32>
    %10 = tpu.matmul %8, %9, %cst_7 {dimension_numbers = #tpu.dot_dimension_numbers<[1], [0], [0], [1], [0, 0, 1, 1], [], []>} : vector<8x512xbf16>, vector<512x128xbf16>, vector<8x128xf32> -> vector<8x128xf32>
    %c0_8 = arith.constant 0 : index
    %c0_9 = arith.constant 0 : index
    %11 = vector.load %arg5[%c0_8, %c0_9] : memref<1x128xf32, #tpu.memory_space<vmem>>, vector<1x128xf32>
    %12 = vector.broadcast %11 : vector<1x128xf32> to vector<8x128xf32>
    %13 = arith.addf %10, %12 : vector<8x128xf32>
    %cst_10 = arith.constant dense<0xFF800000> : vector<8xf32>
    %14 = vector.multi_reduction <maximumf>, %13, %cst_10 [1] : vector<8x128xf32> to vector<8xf32>
    %15 = vector.shape_cast %14 : vector<8xf32> to vector<8x1xf32>
    %16 = vector.broadcast %15 : vector<8x1xf32> to vector<8x128xf32>
    %17 = arith.subf %13, %16 : vector<8x128xf32>
    %18 = math.exp %17 : vector<8x128xf32>
    %cst_11 = arith.constant dense<0.000000e+00> : vector<8xf32>
    %19 = vector.multi_reduction <add>, %18, %cst_11 [1] : vector<8x128xf32> to vector<8xf32>
    %20 = vector.shape_cast %19 : vector<8xf32> to vector<8x1xf32>
    %21 = tpu.reciprocal %20 {approx = true} : vector<8x1xf32> -> vector<8x1xf32>
    %22 = vector.broadcast %21 : vector<8x1xf32> to vector<8x128xf32>
    %23 = arith.mulf %18, %22 : vector<8x128xf32>
    %c0_12 = arith.constant 0 : index
    %c0_13 = arith.constant 0 : index
    %24 = vector.load %arg6[%c0_12, %c0_13] : memref<8x128xf32, #tpu.memory_space<vmem>>, vector<8x128xf32>
    tpu.vector_store %arg6[%c0_12, %c0_13], %23 {strides = array<i32>} : memref<8x128xf32, #tpu.memory_space<vmem>>, vector<8x128xf32>,
    return
  }
  func.func @transform_0(%arg0: i32) -> (i32, i32) {
    %c0_i32 = arith.constant 0 : i32
    %c0_i32_0 = arith.constant 0 : i32
    return %arg0, %c0_i32 : i32, i32
  }
  func.func @transform_1(%arg0: i32) -> (i32, i32) {
    %c0_i32 = arith.constant 0 : i32
    %c0_i32_0 = arith.constant 0 : i32
    %c0_i32_1 = arith.constant 0 : i32
    return %c0_i32, %c0_i32_0 : i32, i32
  }
  func.func @transform_2(%arg0: i32) -> (i32, i32) {
    %c0_i32 = arith.constant 0 : i32
    %c0_i32_0 = arith.constant 0 : i32
    %c0_i32_1 = arith.constant 0 : i32
    return %c0_i32, %c0_i32_0 : i32, i32
  }
  func.func @transform_3(%arg0: i32) -> (i32, i32) {
    %c0_i32 = arith.constant 0 : i32
    %c0_i32_0 = arith.constant 0 : i32
    %c0_i32_1 = arith.constant 0 : i32
    return %c0_i32, %c0_i32_0 : i32, i32
  }
  func.func @transform_4(%arg0: i32) -> (i32, i32) {
    %c0_i32 = arith.constant 0 : i32
    %c0_i32_0 = arith.constant 0 : i32
    %c0_i32_1 = arith.constant 0 : i32
    return %c0_i32, %c0_i32_0 : i32, i32
  }
  func.func @transform_5(%arg0: i32) -> (i32, i32) {
    %c0_i32 = arith.constant 0 : i32
    %c0_i32_0 = arith.constant 0 : i32
    return %arg0, %c0_i32 : i32, i32
  }
}

</mosaic_0001>

<bundles_post_ra>
// kernel: sequential_model_forward.1
= control target key start
LH: loop header
LB: loop body
LE: loop exit
PB: predicated region body
PF: predicated region fallthrough
CT: control target
= control target key end

     0   :  { %vm1222_vm0 = vcmask 130048   ;;  %s4517_s0 = inlined_call_operand.vmem [shape: f32[8,784], index: 0, kind: input, shape index: {}]   ;;  %s4518_s1 = inlined_call_operand.vmem [shape: bf16[784,512], index: 1, kind: input, shape index: {}]   ;;  %s4519_s2 = inlined_call_operand.vmem [shape: f32[1,512], index: 2, kind: input, shape index: {}]   ;;  %s4520_s3 = inlined_call_operand.vmem [shape: bf16[512,128], index: 3, kind: input, shape index: {}]   ;;  %s4521_s4 = inlined_call_operand.vmem [shape: f32[1,128], index: 4, kind: input, shape index: {}]   ;;  %s4522_s5 = inlined_call_operand.hbm [shape: f32[8,128], index: 5, kind: output, shape index: {}]  }
   0x1   :  { %v2050_v0 = vld [vmem:[%s4518_s1 + $0xe0] sm:$0xf]  ;;  %v2882_v1 = vld [vmem:[%s4518_s1 + $0xec] sm:$0xf0] }
   0x2   :  { %v2178_v2 = vld [vmem:[%s4518_s1 + $0x1e0] sm:$0xf]  ;;  %v2051_v3 = vor.u32 %v2882_v1, %v2050_v0  ;;  %v2914_v4 = vld [vmem:[%s4518_s1 + $0x1ec] sm:$0xf0] }
   0x3   :  { %v2306_v5 = vld [vmem:[%s4518_s1 + $0x2e0] sm:$0xf]  ;;  %v2946_v6 = vld [vmem:[%s4518_s1 + $0x2ec] sm:$0xf0]  ;;  %v2179_v7 = vor.u32 %v2914_v4, %v2178_v2 }
   0x4   :  { %v2307_v8 = vor.u32 %v2946_v6, %v2306_v5  ;;  %v2434_v9 = vld [vmem:[%s4518_s1 + $0x3e0] sm:$0xf]  ;;  %v2978_v10 = vld [vmem:[%s4518_s1 + $0x3ec] sm:$0xf0]  ;;  %1226 = vmatpush.bf16.msra.mxu0 %v2051_v3 }
   0x5   :  { %v2034_v11 = vld [vmem:[%s4518_s1 + $0xc0] sm:$0xf]  ;;  %v2435_v12 = vor.u32 %v2978_v10, %v2434_v9  ;;  %v2878_v13 = vld [vmem:[%s4518_s1 + $0xcc] sm:$0xf0]  ;;  %1239 = vmatpush.bf16.msra.mxu1 %v2179_v7 }
   0x6   :  { %v2162_v14 = vld [vmem:[%s4518_s1 + $0x1c0] sm:$0xf]  ;;  %v2910_v15 = vld [vmem:[%s4518_s1 + $0x1cc] sm:$0xf0]  ;;  %1252 = vmatpush.bf16.msra.mxu2 %v2307_v8  ;;  %v2035_v16 = vor.u32 %v2878_v13, %v2034_v11 }
   0x7   :  { %v2163_v17 = vor.u32 %v2910_v15, %v2162_v14  ;;  %v2290_v18 = vld [vmem:[%s4518_s1 + $0x2c0] sm:$0xf]  ;;  %v2942_v19 = vld [vmem:[%s4518_s1 + $0x2cc] sm:$0xf0]  ;;  %1265 = vmatpush.bf16.msra.mxu3 %v2435_v12 }
   0x8   :  { %v2418_v20 = vld [vmem:[%s4518_s1 + $0x3c0] sm:$0xf]  ;;  %v2291_v21 = vor.u32 %v2942_v19, %v2290_v18  ;;  %v2974_v22 = vld [vmem:[%s4518_s1 + $0x3cc] sm:$0xf0]  ;;  %1227 = vmatpush.bf16.msra.mxu0 %v2035_v16 }
   0x9   :  { %v2018_v23 = vld [vmem:[%s4518_s1 + $0xa0] sm:$0xf]  ;;  %v2874_v24 = vld [vmem:[%s4518_s1 + $0xac] sm:$0xf0]  ;;  %v2419_v25 = vor.u32 %v2974_v22, %v2418_v20  ;;  %1240 = vmatpush.bf16.msra.mxu1 %v2163_v17 }
   0xa   :  { %v2146_v26 = vld [vmem:[%s4518_s1 + $0x1a0] sm:$0xf]  ;;  %v2906_v27 = vld [vmem:[%s4518_s1 + $0x1ac] sm:$0xf0]  ;;  %v2019_v29 = vor.u32 %v2874_v24, %v2018_v23  ;;  %1253 = vmatpush.bf16.msra.mxu2 %v2291_v21 }
   0xb   :  { %v2274_v28 = vld [vmem:[%s4518_s1 + $0x2a0] sm:$0xf]  ;;  %v2938_v30 = vld [vmem:[%s4518_s1 + $0x2ac] sm:$0xf0]  ;;  %v2147_v33 = vor.u32 %v2906_v27, %v2146_v26  ;;  %1266 = vmatpush.bf16.msra.mxu3 %v2419_v25 }
   0xc   :  { %v2402_v31 = vld [vmem:[%s4518_s1 + $0x3a0] sm:$0xf]  ;;  %v2970_v32 = vld [vmem:[%s4518_s1 + $0x3ac] sm:$0xf0]  ;;  %v2275_v34 = vor.u32 %v2938_v30, %v2274_v28  ;;  %1228 = vmatpush.bf16.msra.mxu0 %v2019_v29 }
   0xd   :  { %v2002_v35 = vld [vmem:[%s4518_s1 + $0x80] sm:$0xf]  ;;  %v2870_v36 = vld [vmem:[%s4518_s1 + $0x8c] sm:$0xf0]  ;;  %v2403_v38 = vor.u32 %v2970_v32, %v2402_v31  ;;  %1241 = vmatpush.bf16.msra.mxu1 %v2147_v33  ;;  %v2880_v33 = vld [vmem:[%s4518_s1 + $0xe4] sm:$0xf] }
   0xe   :  { %v2130_v37 = vld [vmem:[%s4518_s1 + $0x180] sm:$0xf]  ;;  %v2902_v39 = vld [vmem:[%s4518_s1 + $0x18c] sm:$0xf0]  ;;  %v2003_v44 = vor.u32 %v2870_v36, %v2002_v35  ;;  %1254 = vmatpush.bf16.msra.mxu2 %v2275_v34  ;;  %v2052_v34 = vld [vmem:[%s4518_s1 + $0xf0] sm:$0xf0] }
   0xf   :  { %v2258_v40 = vld [vmem:[%s4518_s1 + $0x280] sm:$0xf]  ;;  %v2934_v41 = vld [vmem:[%s4518_s1 + $0x28c] sm:$0xf0]  ;;  %v2131_v45 = vor.u32 %v2902_v39, %v2130_v37  ;;  %1267 = vmatpush.bf16.msra.mxu3 %v2403_v38 }
  0x10   :  { %v2386_v42 = vld [vmem:[%s4518_s1 + $0x380] sm:$0xf]  ;;  %v2966_v43 = vld [vmem:[%s4518_s1 + $0x38c] sm:$0xf0]  ;;  %v2259_v46 = vor.u32 %v2934_v41, %v2258_v40  ;;  %1229 = vmatpush.bf16.msra.mxu0 %v2003_v44  ;;  %v2180_v44 = vld [vmem:[%s4518_s1 + $0x1f0] sm:$0xf0] }
  0x11   :  { %v1986_v47 = vld [vmem:[%s4518_s1 + $0x60] sm:$0xf]  ;;  %v2866_v48 = vld [vmem:[%s4518_s1 + $0x6c] sm:$0xf0]  ;;  %v2387_v50 = vor.u32 %v2966_v43, %v2386_v42  ;;  %1242 = vmatpush.bf16.msra.mxu1 %v2131_v45  ;;  %v2912_v43 = vld [vmem:[%s4518_s1 + $0x1e4] sm:$0xf] }
  0x12   :  { %v2114_v49 = vld [vmem:[%s4518_s1 + $0x160] sm:$0xf]  ;;  %v2898_v51 = vld [vmem:[%s4518_s1 + $0x16c] sm:$0xf0]  ;;  %v1987_v56 = vor.u32 %v2866_v48, %v1986_v47  ;;  %1255 = vmatpush.bf16.msra.mxu2 %v2259_v46  ;;  %v25_v45 = vld [vmem:[%s4517_s0 + $0x18] sm:$0xff]  ;;  %v2055_v47 = vor.u32 %v2880_v33, %v2052_v34 }
  0x13   :  { %v2242_v52 = vld [vmem:[%s4518_s1 + $0x260] sm:$0xf]  ;;  %v2930_v53 = vld [vmem:[%s4518_s1 + $0x26c] sm:$0xf0]  ;;  %v2115_v57 = vor.u32 %v2898_v51, %v2114_v49  ;;  %1268 = vmatpush.bf16.msra.mxu3 %v2387_v50 }
  0x14   :  { %v2370_v54 = vld [vmem:[%s4518_s1 + $0x360] sm:$0xf]  ;;  %v2962_v55 = vld [vmem:[%s4518_s1 + $0x36c] sm:$0xf0]  ;;  %v2243_v58 = vor.u32 %v2930_v53, %v2242_v52  ;;  %1230 = vmatpush.bf16.msra.mxu0 %v1987_v56  ;;  %v2876_v53 = vld [vmem:[%s4518_s1 + $0xc4] sm:$0xf] }
  0x15   :  { %v1970_v59 = vld [vmem:[%s4518_s1 + $0x40] sm:$0xf]  ;;  %v2862_v60 = vld [vmem:[%s4518_s1 + $0x4c] sm:$0xf0]  ;;  %v2371_v62 = vor.u32 %v2962_v55, %v2370_v54  ;;  %1243 = vmatpush.bf16.msra.mxu1 %v2115_v57  ;;  %v2036_v54 = vld [vmem:[%s4518_s1 + $0xd0] sm:$0xf0]  ;;  %v3404_v57 = vpack.c.bf16 %v25_v45, %v25_v45 }
  0x16   :  { %v2098_v61 = vld [vmem:[%s4518_s1 + $0x140] sm:$0xf]  ;;  %v2894_v63 = vld [vmem:[%s4518_s1 + $0x14c] sm:$0xf0]  ;;  %v1971_v4 = vor.u32 %v2862_v60, %v1970_v59  ;;  %1256 = vmatpush.bf16.msra.mxu2 %v2243_v58  ;;  %v23_v58 = vld [vmem:[%s4517_s0 + $0x8] sm:$0xff]  ;;  %v2183_v59 = vor.u32 %v2912_v43, %v2180_v44 }
  0x17   :  { %v2226_v0 = vld [vmem:[%s4518_s1 + $0x240] sm:$0xf]  ;;  %v2926_v1 = vld [vmem:[%s4518_s1 + $0x24c] sm:$0xf0]  ;;  %v2099_v5 = vor.u32 %v2894_v63, %v2098_v61  ;;  %1269 = vmatpush.bf16.msra.mxu3 %v2371_v62  ;;  %v2908_v61 = vld [vmem:[%s4518_s1 + $0x1c4] sm:$0xf] }
  0x18   :  { %v2354_v2 = vld [vmem:[%s4518_s1 + $0x340] sm:$0xf]  ;;  %v2958_v3 = vld [vmem:[%s4518_s1 + $0x34c] sm:$0xf0]  ;;  %v2227_v6 = vor.u32 %v2926_v1, %v2226_v0  ;;  %1231 = vmatpush.bf16.msra.mxu0 %v1971_v4  ;;  %v2164_v62 = vld [vmem:[%s4518_s1 + $0x1d0] sm:$0xf0]  ;;  %v2039_v0 = vor.u32 %v2876_v53, %v2036_v54 }
  0x19   :  { %v1954_v7 = vld [vmem:[%s4518_s1 + $0x20] sm:$0xf]  ;;  %v2858_v8 = vld [vmem:[%s4518_s1 + $0x2c] sm:$0xf0]  ;;  %v2355_v10 = vor.u32 %v2958_v3, %v2354_v2  ;;  %1244 = vmatpush.bf16.msra.mxu1 %v2099_v5  ;;  %v2872_v5 = vld [vmem:[%s4518_s1 + $0xa4] sm:$0xf] }
  0x1a   :  { %v2082_v9 = vld [vmem:[%s4518_s1 + $0x120] sm:$0xf]  ;;  %v2890_v11 = vld [vmem:[%s4518_s1 + $0x12c] sm:$0xf0]  ;;  %v1955_v16 = vor.u32 %v2858_v8, %v1954_v7  ;;  %1257 = vmatpush.bf16.msra.mxu2 %v2227_v6  ;;  %v2020_v6 = vld [vmem:[%s4518_s1 + $0xb0] sm:$0xf0]  ;;  %v3435_v7 = vpack.c.bf16 %v23_v58, %v23_v58  ;;  %v2167_v8 = vor.u32 %v2908_v61, %v2164_v62 }
  0x1b   :  { %v2210_v12 = vld [vmem:[%s4518_s1 + $0x220] sm:$0xf]  ;;  %v2922_v13 = vld [vmem:[%s4518_s1 + $0x22c] sm:$0xf0]  ;;  %v2083_v20 = vor.u32 %v2890_v11, %v2082_v9  ;;  %1270 = vmatpush.bf16.msra.mxu3 %v2355_v10  ;;  %v2904_v10 = vld [vmem:[%s4518_s1 + $0x1a4] sm:$0xf] }
  0x1c   :  { %v2338_v14 = vld [vmem:[%s4518_s1 + $0x320] sm:$0xf]  ;;  %v2954_v15 = vld [vmem:[%s4518_s1 + $0x32c] sm:$0xf0]  ;;  %v2211_v21 = vor.u32 %v2922_v13, %v2210_v12  ;;  %1232 = vmatpush.bf16.msra.mxu0 %v1955_v16  ;;  %v2148_v11 = vld [vmem:[%s4518_s1 + $0x1b0] sm:$0xf0]  ;;  %v2023_v13 = vor.u32 %v2872_v5, %v2020_v6 }
  0x1d   :  { %v1938_v17 = vld [vmem:[%s4518_s1] sm:$0xf]  ;;  %v2854_v18 = vld [vmem:[%s4518_s1 + $0xc] sm:$0xf0]  ;;  %v2339_v25 = vor.u32 %v2954_v15, %v2338_v14  ;;  %1245 = vmatpush.bf16.msra.mxu1 %v2083_v20  ;;  %v2151_v20 = vor.u32 %v2904_v10, %v2148_v11  ;;  %v2860_v43 = vld [vmem:[%s4518_s1 + $0x44] sm:$0xf] }
  0x1e   :  { %v2066_v19 = vld [vmem:[%s4518_s1 + $0x100] sm:$0xf]  ;;  %v2886_v22 = vld [vmem:[%s4518_s1 + $0x10c] sm:$0xf0]  ;;  %v1939_v32 = vor.u32 %v2854_v18, %v1938_v17  ;;  %1258 = vmatpush.bf16.msra.mxu2 %v2211_v21  ;;  %v2868_v18 = vld [vmem:[%s4518_s1 + $0x84] sm:$0xf] }
  0x1f   :  { %v2194_v23 = vld [vmem:[%s4518_s1 + $0x200] sm:$0xf]  ;;  %v2918_v24 = vld [vmem:[%s4518_s1 + $0x20c] sm:$0xf0]  ;;  %v2067_v36 = vor.u32 %v2886_v22, %v2066_v19  ;;  %1271 = vmatpush.bf16.msra.mxu3 %v2339_v25  ;;  %v2004_v19 = vld [vmem:[%s4518_s1 + $0x90] sm:$0xf0] }
  0x20   :  { %v2322_v26 = vld [vmem:[%s4518_s1 + $0x300] sm:$0xf]  ;;  %v2950_v27 = vld [vmem:[%s4518_s1 + $0x30c] sm:$0xf0]  ;;  %v2195_v37 = vor.u32 %v2918_v24, %v2194_v23  ;;  %1233 = vmatpush.bf16.msra.mxu0 %v1939_v32  ;;  %v2900_v22 = vld [vmem:[%s4518_s1 + $0x184] sm:$0xf]  ;;  %v2007_v25 = vor.u32 %v2868_v18, %v2004_v19 }
  0x21   :  { %v2562_v28 = vld [vmem:[%s4518_s1 + $0x4e0] sm:$0xf]  ;;  %v3010_v29 = vld [vmem:[%s4518_s1 + $0x4ec] sm:$0xf0]  ;;  %v2323_v41 = vor.u32 %v2950_v27, %v2322_v26  ;;  %1246 = vmatpush.bf16.msra.mxu1 %v2067_v36  ;;  %v2132_v23 = vld [vmem:[%s4518_s1 + $0x190] sm:$0xf0] }
  0x22   :  { %v2690_v30 = vld [vmem:[%s4518_s1 + $0x5e0] sm:$0xf]  ;;  %v3042_v31 = vld [vmem:[%s4518_s1 + $0x5ec] sm:$0xf0]  ;;  %v2563_v42 = vor.u32 %v3010_v29, %v2562_v28  ;;  %1259 = vmatpush.bf16.msra.mxu2 %v2195_v37  ;;  %v2135_v33 = vor.u32 %v2900_v22, %v2132_v23  ;;  %v2116_v36 = vld [vmem:[%s4518_s1 + $0x170] sm:$0xf0] }
  0x23   :  { %v24_v35 = vld [vmem:[%s4517_s0 + $0x10] sm:$0xff]  ;;  %v2706_v38 = vld [vmem:[%s4518_s1 + $0x600] sm:$0xf]  ;;  %v2691_v46 = vor.u32 %v3042_v31, %v2690_v30  ;;  %1272 = vmatpush.bf16.msra.mxu3 %v2323_v41  ;;  %v2864_v30 = vld [vmem:[%s4518_s1 + $0x64] sm:$0xf] }
  0x24   :  { %v3046_v39 = vld [vmem:[%s4518_s1 + $0x60c] sm:$0xf0]  ;;  %v22_v40 = vld [vmem:[%s4517_s0] sm:$0xff]  ;;  %v3391_v51 = vpack.c.bf16 %v24_v35, %v24_v35  ;;  %1278 = vmatpush.bf16.msrb.mxu0 %v2563_v42  ;;  %1247 = vmatmul.bf16.vlgmr.msra.gmra.mxu1 %v3435_v7  ;;  %v1988_v31 = vld [vmem:[%s4518_s1 + $0x70] sm:$0xf0] }
  0x25   :  { %v2546_v48 = vld [vmem:[%s4518_s1 + $0x4c0] sm:$0xf]  ;;  %v3006_v49 = vld [vmem:[%s4518_s1 + $0x4cc] sm:$0xf0]  ;;  %v3402_v55 = vpack.c.bf16 %v22_v40, %v22_v40  ;;  %v2707_v56 = vor.u32 %v3046_v39, %v2706_v38  ;;  %1291 = vmatpush.bf16.msrb.mxu1 %v2691_v46  ;;  %v2896_v35 = vld [vmem:[%s4518_s1 + $0x164] sm:$0xf]  ;;  %v1991_v38 = vor.u32 %v2864_v30, %v1988_v31 }
  0x26   :  { %v2674_v50 = vld [vmem:[%s4518_s1 + $0x5c0] sm:$0xf]  ;;  %v3038_v52 = vld [vmem:[%s4518_s1 + $0x5cc] sm:$0xf0]  ;;  %v2547_v60 = vor.u32 %v3006_v49, %v2546_v48  ;;  %1260 = vmatmul.bf16.vlgmr.msra.gmra.mxu2 %v3391_v51  ;;  %1273 = vmatmul.bf16.vlgmr.msra.gmra.mxu3 %v3404_v57  ;;  %v1972_v44 = vld [vmem:[%s4518_s1 + $0x50] sm:$0xf0]  ;;  %v2119_v46 = vor.u32 %v2896_v35, %v2116_v36 }
  0x27   :  { %1317 = vmatpush.bf16.msrb.mxu3 %v2055_v47  ;;  %v2675_v63 = vor.u32 %v3038_v52, %v2674_v50  ;;  %v2530_v1 = vld [vmem:[%s4518_s1 + $0x4a0] sm:$0xf]  ;;  %v3002_v2 = vld [vmem:[%s4518_s1 + $0x4ac] sm:$0xf0]  ;;  %1234 = vmatmul.bf16.vlgmr.msra.gmra.mxu0 %v3402_v55  ;;  %v2892_v48 = vld [vmem:[%s4518_s1 + $0x144] sm:$0xf]  ;;  %v1975_v52 = vor.u32 %v2860_v43, %v1972_v44 }
  0x28   :  { %v2658_v3 = vld [vmem:[%s4518_s1 + $0x5a0] sm:$0xf]  ;;  %v3034_v4 = vld [vmem:[%s4518_s1 + $0x5ac] sm:$0xf0]  ;;  %1311 = vmatpush.bf16.msrb.mxu2 %v2707_v56  ;;  %1279 = vmatpush.bf16.msrb.mxu0 %v2547_v60  ;;  %v2531_v9 = vor.u32 %v3002_v2, %v2530_v1  ;;  %v2100_v49 = vld [vmem:[%s4518_s1 + $0x150] sm:$0xf0] }
  0x29   :  { %1292 = vmatpush.bf16.msrb.mxu1 %v2675_v63  ;;  %v2659_v12 = vor.u32 %v3034_v4, %v2658_v3  ;;  %v2514_v14 = vld [vmem:[%s4518_s1 + $0x480] sm:$0xf]  ;;  %v2998_v15 = vld [vmem:[%s4518_s1 + $0x48c] sm:$0xf0]  ;;  %v1956_v60 = vld [vmem:[%s4518_s1 + $0x30] sm:$0xf0]  ;;  %v2103_v61 = vor.u32 %v2892_v48, %v2100_v49 }
  0x2a   :  { %v2642_v16 = vld [vmem:[%s4518_s1 + $0x580] sm:$0xf]  ;;  %v3030_v17 = vld [vmem:[%s4518_s1 + $0x58c] sm:$0xf0]  ;;  %v2515_v21 = vor.u32 %v2998_v15, %v2514_v14  ;;  %v2888_v63 = vld [vmem:[%s4518_s1 + $0x124] sm:$0xf] }
  0x2b   :  { %1318 = vmatpush.bf16.msrb.mxu3 %v2039_v0  ;;  %v2643_v24 = vor.u32 %v3030_v17, %v2642_v16  ;;  %v2498_v26 = vld [vmem:[%s4518_s1 + $0x460] sm:$0xf]  ;;  %v2994_v27 = vld [vmem:[%s4518_s1 + $0x46c] sm:$0xf0]  ;;  %v2084_v0 = vld [vmem:[%s4518_s1 + $0x130] sm:$0xf0] }
  0x2c   :  { %1330 = vmatpush.bf16.msra.mxu2 %v2183_v59  ;;  %1280 = vmatpush.bf16.msrb.mxu0 %v2531_v9  ;;  %v2626_v28 = vld [vmem:[%s4518_s1 + $0x560] sm:$0xf]  ;;  %v3026_v29 = vld [vmem:[%s4518_s1 + $0x56c] sm:$0xf0]  ;;  %v2499_v34 = vor.u32 %v2994_v27, %v2498_v26  ;;  %v2856_v59 = vld [vmem:[%s4518_s1 + $0x24] sm:$0xf]  ;;  %v2087_v14 = vor.u32 %v2888_v63, %v2084_v0 }
  0x2d   :  { %1293 = vmatpush.bf16.msrb.mxu1 %v2659_v12  ;;  %v28_v32 = vld [vmem:[%s4517_s0 + $0x30] sm:$0xff]  ;;  %v2627_v37 = vor.u32 %v3026_v29, %v2626_v28  ;;  %v2482_v39 = vld [vmem:[%s4518_s1 + $0x440] sm:$0xf]  ;;  %v1959_v3 = vor.u32 %v2856_v59, %v1956_v60  ;;  %v2944_v10 = vld [vmem:[%s4518_s1 + $0x2e4] sm:$0xf] }
  0x2e   :  { %v2990_v40 = vld [vmem:[%s4518_s1 + $0x44c] sm:$0xf0]  ;;  %v2610_v41 = vld [vmem:[%s4518_s1 + $0x540] sm:$0xf]  ;;  %v3514_v45 = vpack.c.bf16 %v28_v32, %v28_v32  ;;  %v1940_v9 = vld [vmem:[%s4518_s1 + $0x10] sm:$0xf0] }
  0x2f   :  { %1319 = vmatpush.bf16.msrb.mxu3 %v2023_v13  ;;  %v3022_v42 = vld [vmem:[%s4518_s1 + $0x54c] sm:$0xf0]  ;;  %v2483_v47 = vor.u32 %v2990_v40, %v2482_v39  ;;  %v2466_v53 = vld [vmem:[%s4518_s1 + $0x420] sm:$0xf]  ;;  %v2308_v11 = vld [vmem:[%s4518_s1 + $0x2f0] sm:$0xf0] }
  0x30   :  { %1331 = vmatpush.bf16.msra.mxu2 %v2167_v8  ;;  %1281 = vmatpush.bf16.msrb.mxu0 %v2515_v21  ;;  %v2611_v50 = vor.u32 %v3022_v42, %v2610_v41  ;;  %v2986_v54 = vld [vmem:[%s4518_s1 + $0x42c] sm:$0xf0]  ;;  %v2594_v56 = vld [vmem:[%s4518_s1 + $0x520] sm:$0xf]  ;;  %v2852_v8 = vld [vmem:[%s4518_s1 + $0x4] sm:$0xf] }
  0x31   :  { %1294 = vmatpush.bf16.msrb.mxu1 %v2643_v24  ;;  %v3018_v58 = vld [vmem:[%s4518_s1 + $0x52c] sm:$0xf0]  ;;  %v2467_v62 = vor.u32 %v2986_v54, %v2466_v53  ;;  %v2450_v1 = vld [vmem:[%s4518_s1 + $0x400] sm:$0xf]  ;;  %v2976_v12 = vld [vmem:[%s4518_s1 + $0x3e4] sm:$0xf]  ;;  %v2311_v24 = vor.u32 %v2944_v10, %v2308_v11 }
  0x32   :  { %v2595_v2 = vor.u32 %v3018_v58, %v2594_v56  ;;  %v2982_v4 = vld [vmem:[%s4518_s1 + $0x40c] sm:$0xf0]  ;;  %v2578_v5 = vld [vmem:[%s4518_s1 + $0x500] sm:$0xf]  ;;  %v2436_v13 = vld [vmem:[%s4518_s1 + $0x3f0] sm:$0xf0] }
  0x33   :  { %1320 = vmatpush.bf16.msrb.mxu3 %v2007_v25  ;;  %v3014_v6 = vld [vmem:[%s4518_s1 + $0x50c] sm:$0xf0]  ;;  %v2451_v15 = vor.u32 %v2982_v4, %v2450_v1  ;;  %v3008_v16 = vld [vmem:[%s4518_s1 + $0x4e4] sm:$0xf]  ;;  %v2564_v17 = vld [vmem:[%s4518_s1 + $0x4f0] sm:$0xf0]  ;;  %v2439_v25 = vor.u32 %v2976_v12, %v2436_v13 }
  0x34   :  { %1332 = vmatpush.bf16.msra.mxu2 %v2151_v20  ;;  %1282 = vmatpush.bf16.msrb.mxu0 %v2499_v34  ;;  %v26_v18 = vld [vmem:[%s4517_s0 + $0x20] sm:$0xff]  ;;  %v2579_v19 = vor.u32 %v3014_v6, %v2578_v5  ;;  %v1943_v20 = vor.u32 %v2852_v8, %v1940_v9  ;;  %v2068_v22 = vld [vmem:[%s4518_s1 + $0x110] sm:$0xf0]  ;;  %v27_v23 = vld [vmem:[%s4517_s0 + $0x28] sm:$0xff]  ;;  %v2567_v29 = vor.u32 %v3008_v16, %v2564_v17 }
  0x35   :  { %1295 = vmatpush.bf16.msrb.mxu1 %v2627_v37  ;;  %v2884_v21 = vld [vmem:[%s4518_s1 + $0x104] sm:$0xf]  ;;  %v2692_v27 = vld [vmem:[%s4518_s1 + $0x5f0] sm:$0xf0]  ;;  %v3605_v30 = vpack.c.bf16 %v26_v18, %v26_v18  ;;  %v3616_v35 = vpack.c.bf16 %v27_v23, %v27_v23 }
  0x36   :  { %2720 = vmatmul.msk.bf16.vlgmr.msrb.gmra.mxu2 %vm1222_vm0, %v3514_v45  ;;  %v3040_v26 = vld [vmem:[%s4518_s1 + $0x5e4] sm:$0xf]  ;;  %v2292_v31 = vld [vmem:[%s4518_s1 + $0x2d0] sm:$0xf0]  ;;  %v2071_v34 = vor.u32 %v2884_v21, %v2068_v22 }
  0x37   :  { %1321 = vmatpush.bf16.msrb.mxu3 %v1991_v38  ;;  %v2940_v28 = vld [vmem:[%s4518_s1 + $0x2c4] sm:$0xf]  ;;  %v2548_v37 = vld [vmem:[%s4518_s1 + $0x4d0] sm:$0xf0]  ;;  %v2695_v38 = vor.u32 %v3040_v26, %v2692_v27 }
  0x38   :  { %1333 = vmatpush.bf16.msra.mxu2 %v2135_v33  ;;  %1283 = vmatpush.bf16.msrb.mxu0 %v2483_v47  ;;  %v2972_v32 = vld [vmem:[%s4518_s1 + $0x3c4] sm:$0xf]  ;;  %v2420_v33 = vld [vmem:[%s4518_s1 + $0x3d0] sm:$0xf0]  ;;  %v2295_v39 = vor.u32 %v2940_v28, %v2292_v31 }
  0x39   :  { %1296 = vmatpush.bf16.msrb.mxu1 %v2611_v50  ;;  %v3004_v36 = vld [vmem:[%s4518_s1 + $0x4c4] sm:$0xf]  ;;  %v2423_v40 = vor.u32 %v2972_v32, %v2420_v33  ;;  %v2676_v42 = vld [vmem:[%s4518_s1 + $0x5d0] sm:$0xf0] }
  0x3a   :  { %v3036_v41 = vld [vmem:[%s4518_s1 + $0x5c4] sm:$0xf]  ;;  %v2551_v44 = vor.u32 %v3004_v36, %v2548_v37  ;;  %v2404_v48 = vld [vmem:[%s4518_s1 + $0x3b0] sm:$0xf0] }
  0x3b   :  { %1322 = vmatpush.bf16.msrb.mxu3 %v1975_v52  ;;  %v2936_v43 = vld [vmem:[%s4518_s1 + $0x2a4] sm:$0xf]  ;;  %v2532_v50 = vld [vmem:[%s4518_s1 + $0x4b0] sm:$0xf0]  ;;  %v2679_v52 = vor.u32 %v3036_v41, %v2676_v42 }
  0x3c   :  { %1334 = vmatpush.bf16.msra.mxu2 %v2119_v46  ;;  %1284 = vmatpush.bf16.msrb.mxu0 %v2467_v62  ;;  %v2276_v46 = vld [vmem:[%s4518_s1 + $0x2b0] sm:$0xf0]  ;;  %v2968_v47 = vld [vmem:[%s4518_s1 + $0x3a4] sm:$0xf] }
  0x3d   :  { %1297 = vmatpush.bf16.msrb.mxu1 %v2595_v2  ;;  %v3000_v49 = vld [vmem:[%s4518_s1 + $0x4a4] sm:$0xf]  ;;  %v2279_v53 = vor.u32 %v2936_v43, %v2276_v46  ;;  %v2407_v54 = vor.u32 %v2968_v47, %v2404_v48  ;;  %v2660_v58 = vld [vmem:[%s4518_s1 + $0x5b0] sm:$0xf0] }
  0x3e   :  { %v3032_v56 = vld [vmem:[%s4518_s1 + $0x5a4] sm:$0xf]  ;;  %v2535_v60 = vor.u32 %v3000_v49, %v2532_v50  ;;  %v2388_v63 = vld [vmem:[%s4518_s1 + $0x390] sm:$0xf0] }
  0x3f   :  { %1323 = vmatpush.bf16.msrb.mxu3 %v1959_v3  ;;  %v2932_v59 = vld [vmem:[%s4518_s1 + $0x284] sm:$0xf]  ;;  %v2516_v1 = vld [vmem:[%s4518_s1 + $0x490] sm:$0xf0]  ;;  %v2663_v2 = vor.u32 %v3032_v56, %v2660_v58 }
  0x40   :  { %1335 = vmatpush.bf16.msra.mxu2 %v2103_v61  ;;  %1285 = vmatpush.bf16.msrb.mxu0 %v2451_v15  ;;  %v2260_v61 = vld [vmem:[%s4518_s1 + $0x290] sm:$0xf0]  ;;  %v2964_v62 = vld [vmem:[%s4518_s1 + $0x384] sm:$0xf] }
  0x41   :  { %1298 = vmatpush.bf16.msrb.mxu1 %v2579_v19  ;;  %v2996_v0 = vld [vmem:[%s4518_s1 + $0x484] sm:$0xf]  ;;  %v2263_v3 = vor.u32 %v2932_v59, %v2260_v61  ;;  %v2391_v4 = vor.u32 %v2964_v62, %v2388_v63  ;;  %v2644_v6 = vld [vmem:[%s4518_s1 + $0x590] sm:$0xf0] }
  0x42   :  { %v3028_v5 = vld [vmem:[%s4518_s1 + $0x584] sm:$0xf]  ;;  %v2519_v9 = vor.u32 %v2996_v0, %v2516_v1  ;;  %v2244_v10 = vld [vmem:[%s4518_s1 + $0x270] sm:$0xf0] }
  0x43   :  { %1324 = vmatpush.bf16.msrb.mxu3 %v1943_v20  ;;  %1286 = vmatmul.bf16.vlgmr.msrb.gmra.mxu0 %v3605_v30  ;;  %v2928_v8 = vld [vmem:[%s4518_s1 + $0x264] sm:$0xf]  ;;  %v2372_v12 = vld [vmem:[%s4518_s1 + $0x370] sm:$0xf0]  ;;  %v2647_v15 = vor.u32 %v3028_v5, %v2644_v6 }
  0x44   :  { %1336 = vmatpush.bf16.msra.mxu2 %v2087_v14  ;;  %1343 = vmatpush.bf16.msra.mxu0 %v2311_v24  ;;  %v2960_v11 = vld [vmem:[%s4518_s1 + $0x364] sm:$0xf]  ;;  %v2500_v14 = vld [vmem:[%s4518_s1 + $0x470] sm:$0xf0]  ;;  %v2247_v16 = vor.u32 %v2928_v8, %v2244_v10 }
  0x45   :  { %1356 = vmatpush.bf16.msra.mxu1 %v2439_v25  ;;  %v2992_v13 = vld [vmem:[%s4518_s1 + $0x464] sm:$0xf]  ;;  %v2375_v17 = vor.u32 %v2960_v11, %v2372_v12  ;;  %v2628_v19 = vld [vmem:[%s4518_s1 + $0x570] sm:$0xf0] }
  0x46   :  { %1299 = vmatmul.bf16.vlgmr.msrb.gmra.mxu1 %v3616_v35  ;;  %1325 = vmatmul.bf16.vlgmr.msrb.gmra.mxu3 %v3402_v55  ;;  %v3024_v18 = vld [vmem:[%s4518_s1 + $0x564] sm:$0xf]  ;;  %v2503_v21 = vor.u32 %v2992_v13, %v2500_v14  ;;  %v2228_v22 = vld [vmem:[%s4518_s1 + $0x250] sm:$0xf0] }
  0x47   :  { %1369 = vmatpush.bf16.msra.mxu3 %v2567_v29  ;;  %v2924_v20 = vld [vmem:[%s4518_s1 + $0x244] sm:$0xf]  ;;  %v2356_v24 = vld [vmem:[%s4518_s1 + $0x350] sm:$0xf0]  ;;  %v2631_v27 = vor.u32 %v3024_v18, %v2628_v19 }
  0x48   :  { %1337 = vmatpush.bf16.msra.mxu2 %v2071_v34  ;;  %1344 = vmatpush.bf16.msra.mxu0 %v2295_v39  ;;  %v2956_v23 = vld [vmem:[%s4518_s1 + $0x344] sm:$0xf]  ;;  %v2484_v26 = vld [vmem:[%s4518_s1 + $0x450] sm:$0xf0]  ;;  %v2231_v28 = vor.u32 %v2924_v20, %v2228_v22 }
  0x49   :  { %1357 = vmatpush.bf16.msra.mxu1 %v2423_v40  ;;  %v2988_v25 = vld [vmem:[%s4518_s1 + $0x444] sm:$0xf]  ;;  %v2359_v29 = vor.u32 %v2956_v23, %v2356_v24  ;;  %v2612_v32 = vld [vmem:[%s4518_s1 + $0x550] sm:$0xf0] }
  0x4a   :  { %v3020_v31 = vld [vmem:[%s4518_s1 + $0x544] sm:$0xf]  ;;  %v2487_v34 = vor.u32 %v2988_v25, %v2484_v26  ;;  %v2212_v36 = vld [vmem:[%s4518_s1 + $0x230] sm:$0xf0] }
  0x4b   :  { %1370 = vmatpush.bf16.msra.mxu3 %v2551_v44  ;;  %1338 = vmatmul.bf16.vlgmr.msra.gmra.mxu2 %v3435_v7  ;;  %v2920_v33 = vld [vmem:[%s4518_s1 + $0x224] sm:$0xf]  ;;  %v2468_v40 = vld [vmem:[%s4518_s1 + $0x430] sm:$0xf0]  ;;  %v2615_v42 = vor.u32 %v3020_v31, %v2612_v32 }
  0x4c   :  { %1382 = vmatpush.bf16.msrb.mxu2 %v2695_v38  ;;  %1345 = vmatpush.bf16.msra.mxu0 %v2279_v53  ;;  %v2952_v37 = vld [vmem:[%s4518_s1 + $0x324] sm:$0xf]  ;;  %v2340_v38 = vld [vmem:[%s4518_s1 + $0x330] sm:$0xf0]  ;;  %v2215_v47 = vor.u32 %v2920_v33, %v2212_v36 }
  0x4d   :  { %1358 = vmatpush.bf16.msra.mxu1 %v2407_v54  ;;  %v2984_v39 = vld [vmem:[%s4518_s1 + $0x424] sm:$0xf]  ;;  %v2596_v43 = vld [vmem:[%s4518_s1 + $0x530] sm:$0xf0]  ;;  %v2343_v48 = vor.u32 %v2952_v37, %v2340_v38 }
  0x4e   :  { %v3016_v41 = vld [vmem:[%s4518_s1 + $0x524] sm:$0xf]  ;;  %v2196_v46 = vld [vmem:[%s4518_s1 + $0x210] sm:$0xf0]  ;;  %v2471_v53 = vor.u32 %v2984_v39, %v2468_v40 }
  0x4f   :  { %1371 = vmatpush.bf16.msra.mxu3 %v2535_v60  ;;  %v2916_v44 = vld [vmem:[%s4518_s1 + $0x204] sm:$0xf]  ;;  %v2324_v50 = vld [vmem:[%s4518_s1 + $0x310] sm:$0xf0] }
  0x50   :  { %1383 = vmatpush.bf16.msrb.mxu2 %v2679_v52  ;;  %1346 = vmatpush.bf16.msra.mxu0 %v2263_v3  ;;  %v2948_v49 = vld [vmem:[%s4518_s1 + $0x304] sm:$0xf]  ;;  %v2452_v54 = vld [vmem:[%s4518_s1 + $0x410] sm:$0xf0] }
  0x51   :  { %1359 = vmatpush.bf16.msra.mxu1 %v2391_v4  ;;  %v2980_v52 = vld [vmem:[%s4518_s1 + $0x404] sm:$0xf] }
  0x53   :  { %1372 = vmatpush.bf16.msra.mxu3 %v2519_v9 }
  0x54   :  { %1384 = vmatpush.bf16.msrb.mxu2 %v2663_v2  ;;  %1347 = vmatpush.bf16.msra.mxu0 %v2247_v16 }
  0x55   :  { %1360 = vmatpush.bf16.msra.mxu1 %v2375_v17 }
  0x57   :  { %1373 = vmatpush.bf16.msra.mxu3 %v2503_v21 }
  0x58   :  { %1385 = vmatpush.bf16.msrb.mxu2 %v2647_v15  ;;  %1348 = vmatpush.bf16.msra.mxu0 %v2231_v28 }
  0x59   :  { %1361 = vmatpush.bf16.msra.mxu1 %v2359_v29 }
  0x5b   :  { %1374 = vmatpush.bf16.msra.mxu3 %v2487_v34 }
  0x5c   :  { %1386 = vmatpush.bf16.msrb.mxu2 %v2631_v27 }
  0x5d   :  { %10 = vsyncpa [#allocation3], 0  ;;  %v2058_v56 = vld [vmem:[%s4518_s1 + $0xe8] sm:$0xf]  ;;  %v2883_v58 = vld [vmem:[%s4518_s1 + $0xf4] sm:$0xf0]  ;;  %v2599_v60 = vor.u32 %v3016_v41, %v2596_v43  ;;  %1349 = vmatpush.bf16.msra.mxu0 %v2215_v47  ;;  %1362 = vmatpush.bf16.msra.mxu1 %v2343_v48  ;;  %v2199_v0 = vor.u32 %v2916_v44, %v2196_v46  ;;  %v2327_v1 = vor.u32 %v2948_v49, %v2324_v50 }
  0x5e   :  { %v3044_v59 = vld [vmem:[%s4518_s1 + $0x604] sm:$0xf]  ;;  %v2708_v61 = vld [vmem:[%s4518_s1 + $0x610] sm:$0xf0]  ;;  %v2314_v62 = vld [vmem:[%s4518_s1 + $0x2e8] sm:$0xf]  ;;  %v2455_v4 = vor.u32 %v2980_v52, %v2452_v54  ;;  %v2059_v5 = vor.u32 %v2883_v58, %v2058_v56 }
  0x5f   :  { %v2947_v63 = vld [vmem:[%s4518_s1 + $0x2f4] sm:$0xf0]  ;;  %v3012_v2 = vld [vmem:[%s4518_s1 + $0x504] sm:$0xf]  ;;  %v2580_v3 = vld [vmem:[%s4518_s1 + $0x510] sm:$0xf0]  ;;  %1375 = vmatpush.bf16.msra.mxu3 %v2471_v53  ;;  %v2711_v9 = vor.u32 %v3044_v59, %v2708_v61 }
  0x60   :  { %1387 = vmatpush.bf16.msrb.mxu2 %v2615_v42  ;;  %v2442_v6 = vld [vmem:[%s4518_s1 + $0x3e8] sm:$0xf]  ;;  %v2979_v8 = vld [vmem:[%s4518_s1 + $0x3f4] sm:$0xf0]  ;;  %v2315_v12 = vor.u32 %v2947_v63, %v2314_v62  ;;  %v2583_v13 = vor.u32 %v3012_v2, %v2580_v3  ;;  %s1927_s7 = sshll.u32 %s4522_s5, 4  ;;  %s1928_s7 = int_to_ptr.hbm [resolvable:$true] %s1927_s7 }
  0x61   :  { %v2186_v10 = vld [vmem:[%s4518_s1 + $0x1e8] sm:$0xf]  ;;  %v2915_v11 = vld [vmem:[%s4518_s1 + $0x1f4] sm:$0xf0]  ;;  %1350 = vmatpush.bf16.msra.mxu0 %v2199_v0  ;;  %1363 = vmatpush.bf16.msra.mxu1 %v2327_v1  ;;  %v2443_v16 = vor.u32 %v2979_v8, %v2442_v6 }
  0x62   :  { %v2042_v14 = vld [vmem:[%s4518_s1 + $0xc8] sm:$0xf]  ;;  %v2879_v15 = vld [vmem:[%s4518_s1 + $0xd4] sm:$0xf0]  ;;  %v2187_v19 = vor.u32 %v2915_v11, %v2186_v10 }
  0x63   :  { %v2298_v17 = vld [vmem:[%s4518_s1 + $0x2c8] sm:$0xf]  ;;  %v2943_v18 = vld [vmem:[%s4518_s1 + $0x2d4] sm:$0xf0]  ;;  %1376 = vmatpush.bf16.msra.mxu3 %v2455_v4  ;;  %v2043_v22 = vor.u32 %v2879_v15, %v2042_v14 }
  0x64   :  { %1388 = vmatpush.bf16.msrb.mxu2 %v2599_v60  ;;  %v2426_v20 = vld [vmem:[%s4518_s1 + $0x3c8] sm:$0xf]  ;;  %v2975_v21 = vld [vmem:[%s4518_s1 + $0x3d4] sm:$0xf0]  ;;  %1351 = vmatmul.bf16.vlgmr.msra.gmra.mxu0 %v3391_v51  ;;  %v2299_v25 = vor.u32 %v2943_v18, %v2298_v17 }
  0x65   :  { %1408 = vmatpush.bf16.msrb.mxu1 %v2059_v5  ;;  %1434 = vmatpush.bf16.msrb.mxu0 %v2315_v12  ;;  %v2170_v23 = vld [vmem:[%s4518_s1 + $0x1c8] sm:$0xf]  ;;  %v2911_v24 = vld [vmem:[%s4518_s1 + $0x1d4] sm:$0xf0]  ;;  %v2427_v28 = vor.u32 %v2975_v21, %v2426_v20 }
  0x66   :  { %v2026_v26 = vld [vmem:[%s4518_s1 + $0xa8] sm:$0xf]  ;;  %v2875_v27 = vld [vmem:[%s4518_s1 + $0xb4] sm:$0xf0]  ;;  %1377 = vmatmul.bf16.vlgmr.msra.gmra.mxu3 %v3605_v30  ;;  %1364 = vmatmul.bf16.vlgmr.msra.gmra.mxu1 %v3404_v57  ;;  %v2171_v32 = vor.u32 %v2911_v24, %v2170_v23 }
  0x67   :  { %1402 = vmatpush.bf16.msrb.mxu3 %v2711_v9  ;;  %v2282_v29 = vld [vmem:[%s4518_s1 + $0x2a8] sm:$0xf]  ;;  %v2939_v31 = vld [vmem:[%s4518_s1 + $0x2b4] sm:$0xf0]  ;;  %v2027_v36 = vor.u32 %v2875_v27, %v2026_v26 }
  0x68   :  { %1389 = vmatpush.bf16.msrb.mxu2 %v2583_v13  ;;  %v2410_v33 = vld [vmem:[%s4518_s1 + $0x3a8] sm:$0xf]  ;;  %v2971_v34 = vld [vmem:[%s4518_s1 + $0x3b4] sm:$0xf0]  ;;  %v2283_v39 = vor.u32 %v2939_v31, %v2282_v29 }
  0x69   :  { %1409 = vmatpush.bf16.msrb.mxu1 %v2043_v22  ;;  %v2154_v37 = vld [vmem:[%s4518_s1 + $0x1a8] sm:$0xf]  ;;  %v2907_v38 = vld [vmem:[%s4518_s1 + $0x1b4] sm:$0xf0]  ;;  %1435 = vmatpush.bf16.msrb.mxu0 %v2299_v25  ;;  %v2411_v42 = vor.u32 %v2971_v34, %v2410_v33 }
  0x6a   :  { %v2010_v40 = vld [vmem:[%s4518_s1 + $0x88] sm:$0xf]  ;;  %v2871_v41 = vld [vmem:[%s4518_s1 + $0x94] sm:$0xf0]  ;;  %v2155_v46 = vor.u32 %v2907_v38, %v2154_v37 }
  0x6b   :  { %1421 = vmatpush.bf16.msra.mxu3 %v2187_v19  ;;  %1390 = vmatmul.bf16.vlgmr.msrb.gmra.mxu2 %v3616_v35  ;;  %v2266_v43 = vld [vmem:[%s4518_s1 + $0x288] sm:$0xf]  ;;  %v2935_v44 = vld [vmem:[%s4518_s1 + $0x294] sm:$0xf0]  ;;  %v2011_v49 = vor.u32 %v2871_v41, %v2010_v40 }
  0x6c   :  { %1447 = vmatpush.bf16.msra.mxu2 %v2443_v16  ;;  %v2394_v47 = vld [vmem:[%s4518_s1 + $0x388] sm:$0xf]  ;;  %v2967_v48 = vld [vmem:[%s4518_s1 + $0x394] sm:$0xf0]  ;;  %v2267_v53 = vor.u32 %v2935_v44, %v2266_v43 }
  0x6d   :  { %1410 = vmatpush.bf16.msrb.mxu1 %v2027_v36  ;;  %v2138_v50 = vld [vmem:[%s4518_s1 + $0x188] sm:$0xf]  ;;  %v2903_v52 = vld [vmem:[%s4518_s1 + $0x194] sm:$0xf0]  ;;  %1436 = vmatpush.bf16.msrb.mxu0 %v2283_v39  ;;  %v2395_v58 = vor.u32 %v2967_v48, %v2394_v47  ;;  %v2881_v47 = vld [vmem:[%s4518_s1 + $0xec] sm:$0xf] }
  0x6e   :  { %v1994_v54 = vld [vmem:[%s4518_s1 + $0x68] sm:$0xf]  ;;  %v2867_v56 = vld [vmem:[%s4518_s1 + $0x74] sm:$0xf0]  ;;  %v2139_v61 = vor.u32 %v2903_v52, %v2138_v50  ;;  %v2060_v48 = vld [vmem:[%s4518_s1 + $0xf8] sm:$0xf0] }
  0x6f   :  { %1422 = vmatpush.bf16.msra.mxu3 %v2171_v32  ;;  %v2250_v59 = vld [vmem:[%s4518_s1 + $0x268] sm:$0xf]  ;;  %v2931_v60 = vld [vmem:[%s4518_s1 + $0x274] sm:$0xf0]  ;;  %v1995_v0 = vor.u32 %v2867_v56, %v1994_v54 }
  0x70   :  { %1448 = vmatpush.bf16.msra.mxu2 %v2427_v28  ;;  %v2378_v62 = vld [vmem:[%s4518_s1 + $0x368] sm:$0xf]  ;;  %v2963_v63 = vld [vmem:[%s4518_s1 + $0x374] sm:$0xf0]  ;;  %v2251_v3 = vor.u32 %v2931_v60, %v2250_v59  ;;  %v2913_v60 = vld [vmem:[%s4518_s1 + $0x1ec] sm:$0xf] }
  0x71   :  { %1411 = vmatpush.bf16.msrb.mxu1 %v2011_v49  ;;  %v2122_v1 = vld [vmem:[%s4518_s1 + $0x168] sm:$0xf]  ;;  %v2899_v2 = vld [vmem:[%s4518_s1 + $0x174] sm:$0xf0]  ;;  %1437 = vmatpush.bf16.msrb.mxu0 %v2267_v53  ;;  %v2379_v6 = vor.u32 %v2963_v63, %v2378_v62  ;;  %v2063_v63 = vor.u32 %v2881_v47, %v2060_v48 }
  0x72   :  { %v1978_v4 = vld [vmem:[%s4518_s1 + $0x48] sm:$0xf]  ;;  %v2863_v5 = vld [vmem:[%s4518_s1 + $0x54] sm:$0xf0]  ;;  %v2123_v10 = vor.u32 %v2899_v2, %v2122_v1  ;;  %v2877_v1 = vld [vmem:[%s4518_s1 + $0xcc] sm:$0xf] }
  0x73   :  { %1423 = vmatpush.bf16.msra.mxu3 %v2155_v46  ;;  %v2234_v8 = vld [vmem:[%s4518_s1 + $0x248] sm:$0xf]  ;;  %v2927_v9 = vld [vmem:[%s4518_s1 + $0x254] sm:$0xf0]  ;;  %v1979_v13 = vor.u32 %v2863_v5, %v1978_v4  ;;  %v2044_v2 = vld [vmem:[%s4518_s1 + $0xd8] sm:$0xf0] }
  0x74   :  { %1449 = vmatpush.bf16.msra.mxu2 %v2411_v42  ;;  %v2362_v11 = vld [vmem:[%s4518_s1 + $0x348] sm:$0xf]  ;;  %v2959_v12 = vld [vmem:[%s4518_s1 + $0x354] sm:$0xf0]  ;;  %v2235_v16 = vor.u32 %v2927_v9, %v2234_v8 }
  0x75   :  { %1412 = vmatpush.bf16.msrb.mxu1 %v1995_v0  ;;  %v2106_v14 = vld [vmem:[%s4518_s1 + $0x148] sm:$0xf]  ;;  %v2895_v15 = vld [vmem:[%s4518_s1 + $0x154] sm:$0xf0]  ;;  %1438 = vmatpush.bf16.msrb.mxu0 %v2251_v3  ;;  %v2363_v19 = vor.u32 %v2959_v12, %v2362_v11  ;;  %v2172_v11 = vld [vmem:[%s4518_s1 + $0x1d8] sm:$0xf0]  ;;  %v2047_v12 = vor.u32 %v2877_v1, %v2044_v2 }
  0x76   :  { %v1962_v17 = vld [vmem:[%s4518_s1 + $0x28] sm:$0xf]  ;;  %v2859_v18 = vld [vmem:[%s4518_s1 + $0x34] sm:$0xf0]  ;;  %2721 = vmatmul.msk.bf16.vlgmr.msrb.gmra.mxu3 %vm1222_vm0, %v3514_v45  ;;  %v2107_v22 = vor.u32 %v2895_v15, %v2106_v14  ;;  %v2873_v14 = vld [vmem:[%s4518_s1 + $0xac] sm:$0xf] }
  0x77   :  { %1424 = vmatpush.bf16.msra.mxu3 %v2139_v61  ;;  %v2218_v20 = vld [vmem:[%s4518_s1 + $0x228] sm:$0xf]  ;;  %v2923_v21 = vld [vmem:[%s4518_s1 + $0x234] sm:$0xf0]  ;;  %v1963_v25 = vor.u32 %v2859_v18, %v1962_v17  ;;  %v2188_v61 = vld [vmem:[%s4518_s1 + $0x1f8] sm:$0xf0] }
  0x78   :  { %1450 = vmatpush.bf16.msra.mxu2 %v2395_v58  ;;  %v2346_v23 = vld [vmem:[%s4518_s1 + $0x328] sm:$0xf]  ;;  %v2955_v24 = vld [vmem:[%s4518_s1 + $0x334] sm:$0xf0]  ;;  %v2219_v29 = vor.u32 %v2923_v21, %v2218_v20  ;;  %v2191_v4 = vor.u32 %v2913_v60, %v2188_v61  ;;  %v2028_v15 = vld [vmem:[%s4518_s1 + $0xb8] sm:$0xf0] }
  0x79   :  { %1413 = vmatpush.bf16.msrb.mxu1 %v1979_v13  ;;  %v2090_v26 = vld [vmem:[%s4518_s1 + $0x128] sm:$0xf]  ;;  %v2891_v27 = vld [vmem:[%s4518_s1 + $0x134] sm:$0xf0]  ;;  %1439 = vmatpush.bf16.msrb.mxu0 %v2235_v16  ;;  %v2347_v34 = vor.u32 %v2955_v24, %v2346_v23  ;;  %v2156_v23 = vld [vmem:[%s4518_s1 + $0x1b8] sm:$0xf0]  ;;  %v2031_v24 = vor.u32 %v2873_v14, %v2028_v15 }
  0x7a   :  { %v1946_v28 = vld [vmem:[%s4518_s1 + $0x8] sm:$0xf]  ;;  %v2855_v31 = vld [vmem:[%s4518_s1 + $0x14] sm:$0xf0]  ;;  %v2091_v40 = vor.u32 %v2891_v27, %v2090_v26  ;;  %v2869_v26 = vld [vmem:[%s4518_s1 + $0x8c] sm:$0xf] }
  0x7b   :  { %1425 = vmatpush.bf16.msra.mxu3 %v2123_v10  ;;  %v2570_v32 = vld [vmem:[%s4518_s1 + $0x4e8] sm:$0xf]  ;;  %v3011_v33 = vld [vmem:[%s4518_s1 + $0x4f4] sm:$0xf0]  ;;  %v1947_v44 = vor.u32 %v2855_v31, %v1946_v28  ;;  %v2909_v10 = vld [vmem:[%s4518_s1 + $0x1cc] sm:$0xf] }
  0x7c   :  { %1451 = vmatpush.bf16.msra.mxu2 %v2379_v6  ;;  %v2074_v36 = vld [vmem:[%s4518_s1 + $0x108] sm:$0xf]  ;;  %v2919_v38 = vld [vmem:[%s4518_s1 + $0x214] sm:$0xf0]  ;;  %v2571_v49 = vor.u32 %v3011_v33, %v2570_v32  ;;  %v2175_v17 = vor.u32 %v2909_v10, %v2172_v11  ;;  %v2012_v27 = vld [vmem:[%s4518_s1 + $0x98] sm:$0xf0] }
  0x7d   :  { %v2202_v37 = vld [vmem:[%s4518_s1 + $0x208] sm:$0xf]  ;;  %v2951_v41 = vld [vmem:[%s4518_s1 + $0x314] sm:$0xf0]  ;;  %1414 = vmatpush.bf16.msrb.mxu1 %v1963_v25  ;;  %1440 = vmatpush.bf16.msrb.mxu0 %v2219_v29  ;;  %v2108_v1 = vld [vmem:[%s4518_s1 + $0x158] sm:$0xf0] }
  0x7e   :  { %v2330_v39 = vld [vmem:[%s4518_s1 + $0x308] sm:$0xf]  ;;  %v3047_v43 = vld [vmem:[%s4518_s1 + $0x614] sm:$0xf0]  ;;  %v2203_v50 = vor.u32 %v2919_v38, %v2202_v37  ;;  %v2140_v37 = vld [vmem:[%s4518_s1 + $0x198] sm:$0xf0]  ;;  %v2015_v38 = vor.u32 %v2869_v26, %v2012_v27 }
  0x7f   :  { %1426 = vmatpush.bf16.msra.mxu3 %v2107_v22  ;;  %v2714_v42 = vld [vmem:[%s4518_s1 + $0x608] sm:$0xf]  ;;  %v2887_v46 = vld [vmem:[%s4518_s1 + $0x114] sm:$0xf0]  ;;  %v2331_v56 = vor.u32 %v2951_v41, %v2330_v39  ;;  %v2905_v22 = vld [vmem:[%s4518_s1 + $0x1ac] sm:$0xf] }
  0x80   :  { %1452 = vmatpush.bf16.msra.mxu2 %v2363_v19  ;;  %v2698_v52 = vld [vmem:[%s4518_s1 + $0x5e8] sm:$0xf]  ;;  %v3043_v53 = vld [vmem:[%s4518_s1 + $0x5f4] sm:$0xf0]  ;;  %v2715_v59 = vor.u32 %v3047_v43, %v2714_v42  ;;  %v2075_v62 = vor.u32 %v2887_v46, %v2074_v36  ;;  %v2159_v29 = vor.u32 %v2905_v22, %v2156_v23  ;;  %v2901_v36 = vld [vmem:[%s4518_s1 + $0x18c] sm:$0xf] }
  0x81   :  { %v2554_v54 = vld [vmem:[%s4518_s1 + $0x4c8] sm:$0xf]  ;;  %v3007_v58 = vld [vmem:[%s4518_s1 + $0x4d4] sm:$0xf0]  ;;  %1415 = vmatpush.bf16.msrb.mxu1 %v1947_v44  ;;  %v2699_v0 = vor.u32 %v3043_v53, %v2698_v52  ;;  %1441 = vmatpush.bf16.msrb.mxu0 %v2203_v50  ;;  %v1996_v41 = vld [vmem:[%s4518_s1 + $0x78] sm:$0xf0]  ;;  %v2143_v43 = vor.u32 %v2901_v36, %v2140_v37 }
  0x82   :  { %v2555_v3 = vor.u32 %v3007_v58, %v2554_v54  ;;  %v2682_v5 = vld [vmem:[%s4518_s1 + $0x5c8] sm:$0xf]  ;;  %v3039_v6 = vld [vmem:[%s4518_s1 + $0x5d4] sm:$0xf0]  ;;  %v2124_v50 = vld [vmem:[%s4518_s1 + $0x178] sm:$0xf0] }
  0x83   :  { %1427 = vmatpush.bf16.msra.mxu3 %v2091_v40  ;;  %v2538_v8 = vld [vmem:[%s4518_s1 + $0x4a8] sm:$0xf]  ;;  %v3003_v9 = vld [vmem:[%s4518_s1 + $0x4b4] sm:$0xf0]  ;;  %v2683_v13 = vor.u32 %v3039_v6, %v2682_v5  ;;  %v2865_v40 = vld [vmem:[%s4518_s1 + $0x6c] sm:$0xf] }
  0x84   :  { %1453 = vmatpush.bf16.msra.mxu2 %v2347_v34  ;;  %1442 = vmatmul.bf16.vlgmr.msrb.gmra.mxu0 %v3391_v51  ;;  %v2539_v16 = vor.u32 %v3003_v9, %v2538_v8  ;;  %v2666_v18 = vld [vmem:[%s4518_s1 + $0x5a8] sm:$0xf]  ;;  %v3035_v19 = vld [vmem:[%s4518_s1 + $0x5b4] sm:$0xf0]  ;;  %v1999_v52 = vor.u32 %v2865_v40, %v1996_v41  ;;  %v2861_v54 = vld [vmem:[%s4518_s1 + $0x4c] sm:$0xf] }
  0x85   :  { %1460 = vmatpush.bf16.msra.mxu1 %v2571_v49  ;;  %1493 = vmatpush.bf16.msra.mxu0 %v2715_v59  ;;  %v2522_v20 = vld [vmem:[%s4518_s1 + $0x488] sm:$0xf]  ;;  %v2999_v21 = vld [vmem:[%s4518_s1 + $0x494] sm:$0xf0]  ;;  %v2667_v25 = vor.u32 %v3035_v19, %v2666_v18  ;;  %v2897_v49 = vld [vmem:[%s4518_s1 + $0x16c] sm:$0xf] }
  0x86   :  { %1416 = vmatmul.bf16.vlgmr.msrb.gmra.mxu1 %v3402_v55  ;;  %v2523_v28 = vor.u32 %v2999_v21, %v2522_v20  ;;  %v2650_v31 = vld [vmem:[%s4518_s1 + $0x588] sm:$0xf]  ;;  %v3031_v32 = vld [vmem:[%s4518_s1 + $0x594] sm:$0xf0]  ;;  %v2127_v59 = vor.u32 %v2897_v49, %v2124_v50  ;;  %v1964_v5 = vld [vmem:[%s4518_s1 + $0x38] sm:$0xf0] }
  0x87   :  { %1428 = vmatpush.bf16.msra.mxu3 %v2075_v62  ;;  %v2506_v33 = vld [vmem:[%s4518_s1 + $0x468] sm:$0xf]  ;;  %v2995_v34 = vld [vmem:[%s4518_s1 + $0x474] sm:$0xf0]  ;;  %v2651_v39 = vor.u32 %v3031_v32, %v2650_v31  ;;  %v2092_v14 = vld [vmem:[%s4518_s1 + $0x138] sm:$0xf0] }
  0x88   :  { %1454 = vmatpush.bf16.msra.mxu2 %v2331_v56  ;;  %v2507_v42 = vor.u32 %v2995_v34, %v2506_v33  ;;  %v2634_v44 = vld [vmem:[%s4518_s1 + $0x568] sm:$0xf]  ;;  %v3027_v46 = vld [vmem:[%s4518_s1 + $0x574] sm:$0xf0]  ;;  %v1980_v56 = vld [vmem:[%s4518_s1 + $0x58] sm:$0xf0] }
  0x89   :  { %1461 = vmatpush.bf16.msra.mxu1 %v2555_v3  ;;  %1512 = vmatpush.bf16.msrb.mxu0 %v2191_v4  ;;  %v2490_v47 = vld [vmem:[%s4518_s1 + $0x448] sm:$0xf]  ;;  %v2991_v48 = vld [vmem:[%s4518_s1 + $0x454] sm:$0xf0]  ;;  %v2635_v53 = vor.u32 %v3027_v46, %v2634_v44  ;;  %v1983_v2 = vor.u32 %v2861_v54, %v1980_v56  ;;  %v2857_v4 = vld [vmem:[%s4518_s1 + $0x2c] sm:$0xf] }
  0x8a   :  { %1429 = vmatmul.bf16.vlgmr.msra.gmra.mxu3 %v3435_v7  ;;  %v2491_v58 = vor.u32 %v2991_v48, %v2490_v47  ;;  %v2618_v60 = vld [vmem:[%s4518_s1 + $0x548] sm:$0xf]  ;;  %v3023_v61 = vld [vmem:[%s4518_s1 + $0x554] sm:$0xf0]  ;;  %v1967_v15 = vor.u32 %v2857_v4, %v1964_v5  ;;  %v2853_v20 = vld [vmem:[%s4518_s1 + $0xc] sm:$0xf] }
  0x8b   :  { %1473 = vmatpush.bf16.msrb.mxu3 %v2699_v0  ;;  %1455 = vmatmul.bf16.vlgmr.msra.gmra.mxu2 %v3404_v57  ;;  %v2474_v62 = vld [vmem:[%s4518_s1 + $0x428] sm:$0xf]  ;;  %v2893_v0 = vld [vmem:[%s4518_s1 + $0x14c] sm:$0xf]  ;;  %v2619_v3 = vor.u32 %v3023_v61, %v2618_v60  ;;  %v3019_v10 = vld [vmem:[%s4518_s1 + $0x534] sm:$0xf0] }
  0x8c   :  { %1499 = vmatpush.bf16.msrb.mxu2 %v2063_v63  ;;  %v2987_v63 = vld [vmem:[%s4518_s1 + $0x434] sm:$0xf0]  ;;  %v2111_v8 = vor.u32 %v2893_v0, %v2108_v1  ;;  %v2602_v9 = vld [vmem:[%s4518_s1 + $0x528] sm:$0xf]  ;;  %v1948_v21 = vld [vmem:[%s4518_s1 + $0x18] sm:$0xf0] }
  0x8d   :  { %1462 = vmatpush.bf16.msra.mxu1 %v2539_v16  ;;  %1513 = vmatpush.bf16.msrb.mxu0 %v2175_v17  ;;  %v2475_v6 = vor.u32 %v2987_v63, %v2474_v62  ;;  %v2458_v11 = vld [vmem:[%s4518_s1 + $0x408] sm:$0xf]  ;;  %v2945_v16 = vld [vmem:[%s4518_s1 + $0x2ec] sm:$0xf]  ;;  %v2316_v17 = vld [vmem:[%s4518_s1 + $0x2f8] sm:$0xf0]  ;;  %v2603_v18 = vor.u32 %v3019_v10, %v2602_v9  ;;  %v1951_v32 = vor.u32 %v2853_v20, %v1948_v21 }
  0x8e   :  { %v2586_v19 = vld [vmem:[%s4518_s1 + $0x508] sm:$0xf]  ;;  %v2444_v26 = vld [vmem:[%s4518_s1 + $0x3f8] sm:$0xf0]  ;;  %v2319_v27 = vor.u32 %v2945_v16, %v2316_v17  ;;  %v2941_v31 = vld [vmem:[%s4518_s1 + $0x2cc] sm:$0xf] }
  0x8f   :  { %1474 = vmatpush.bf16.msrb.mxu3 %v2683_v13  ;;  %v2889_v13 = vld [vmem:[%s4518_s1 + $0x12c] sm:$0xf]  ;;  %v2300_v33 = vld [vmem:[%s4518_s1 + $0x2d8] sm:$0xf0] }
  0x90   :  { %1500 = vmatpush.bf16.msrb.mxu2 %v2047_v12  ;;  %v2983_v12 = vld [vmem:[%s4518_s1 + $0x414] sm:$0xf0]  ;;  %v2095_v23 = vor.u32 %v2889_v13, %v2092_v14  ;;  %v2885_v34 = vld [vmem:[%s4518_s1 + $0x10c] sm:$0xf]  ;;  %v2076_v36 = vld [vmem:[%s4518_s1 + $0x118] sm:$0xf0] }
  0x91   :  { %1463 = vmatpush.bf16.msra.mxu1 %v2523_v28  ;;  %1514 = vmatpush.bf16.msrb.mxu0 %v2159_v29  ;;  %v2459_v22 = vor.u32 %v2983_v12, %v2458_v11  ;;  %v3009_v28 = vld [vmem:[%s4518_s1 + $0x4ec] sm:$0xf]  ;;  %v2572_v29 = vld [vmem:[%s4518_s1 + $0x4f8] sm:$0xf0]  ;;  %v2079_v44 = vor.u32 %v2885_v34, %v2076_v36 }
  0x92   :  { %v2575_v41 = vor.u32 %v3009_v28, %v2572_v29  ;;  %v2428_v46 = vld [vmem:[%s4518_s1 + $0x3d8] sm:$0xf0]  ;;  %v3005_v47 = vld [vmem:[%s4518_s1 + $0x4cc] sm:$0xf] }
  0x93   :  { %1475 = vmatpush.bf16.msrb.mxu3 %v2667_v25  ;;  %v2977_v25 = vld [vmem:[%s4518_s1 + $0x3ec] sm:$0xf]  ;;  %v2556_v48 = vld [vmem:[%s4518_s1 + $0x4d8] sm:$0xf0] }
  0x94   :  { %1501 = vmatpush.bf16.msrb.mxu2 %v2031_v24  ;;  %2722 = vmatmul.msk.bf16.vlgmr.msra.gmra.mxu0 %vm1222_vm0, %v3514_v45  ;;  %v3015_v24 = vld [vmem:[%s4518_s1 + $0x514] sm:$0xf0]  ;;  %v2447_v40 = vor.u32 %v2977_v25, %v2444_v26  ;;  %v2937_v50 = vld [vmem:[%s4518_s1 + $0x2ac] sm:$0xf]  ;;  %v2684_v54 = vld [vmem:[%s4518_s1 + $0x5d8] sm:$0xf0] }
  0x95   :  { %1464 = vmatpush.bf16.msra.mxu1 %v2507_v42  ;;  %1515 = vmatpush.bf16.msrb.mxu0 %v2143_v43  ;;  %v2587_v37 = vor.u32 %v3015_v24, %v2586_v19  ;;  %v2973_v42 = vld [vmem:[%s4518_s1 + $0x3cc] sm:$0xf]  ;;  %v2303_v43 = vor.u32 %v2941_v31, %v2300_v33  ;;  %v2412_v61 = vld [vmem:[%s4518_s1 + $0x3b8] sm:$0xf0]  ;;  %v4323_v31 = vld [vmem:[%s4519_s2] sm:$0xf] }
  0x96   :  { %v2431_v56 = vor.u32 %v2973_v42, %v2428_v46  ;;  %v3001_v62 = vld [vmem:[%s4518_s1 + $0x4ac] sm:$0xf]  ;;  %v2540_v63 = vld [vmem:[%s4518_s1 + $0x4b8] sm:$0xf0] }
  0x97   :  { %1476 = vmatpush.bf16.msrb.mxu3 %v2651_v39  ;;  %v2700_v39 = vld [vmem:[%s4518_s1 + $0x5f8] sm:$0xf0]  ;;  %v2933_v1 = vld [vmem:[%s4518_s1 + $0x28c] sm:$0xf] }
  0x98   :  { %1502 = vmatpush.bf16.msrb.mxu2 %v2015_v38  ;;  %v3041_v38 = vld [vmem:[%s4518_s1 + $0x5ec] sm:$0xf]  ;;  %v2668_v4 = vld [vmem:[%s4518_s1 + $0x5b8] sm:$0xf0] }
  0x99   :  { %1465 = vmatpush.bf16.msra.mxu1 %v2491_v58  ;;  %1516 = vmatpush.bf16.msrb.mxu0 %v2127_v59  ;;  %v2703_v49 = vor.u32 %v3041_v38, %v2700_v39  ;;  %v2559_v58 = vor.u32 %v3005_v47, %v2556_v48  ;;  %v2969_v59 = vld [vmem:[%s4518_s1 + $0x3ac] sm:$0xf]  ;;  %v2524_v11 = vld [vmem:[%s4518_s1 + $0x498] sm:$0xf0] }
  0x9a   :  { %v2415_v5 = vor.u32 %v2969_v59, %v2412_v61  ;;  %v2997_v10 = vld [vmem:[%s4518_s1 + $0x48c] sm:$0xf]  ;;  %v2252_v14 = vld [vmem:[%s4518_s1 + $0x278] sm:$0xf0] }
  0x9b   :  { %1477 = vmatpush.bf16.msrb.mxu3 %v2635_v53  ;;  %v3037_v53 = vld [vmem:[%s4518_s1 + $0x5cc] sm:$0xf]  ;;  %v2380_v21 = vld [vmem:[%s4518_s1 + $0x378] sm:$0xf0] }
  0x9c   :  { %1503 = vmatpush.bf16.msrb.mxu2 %v1999_v52  ;;  %v2284_v52 = vld [vmem:[%s4518_s1 + $0x2b8] sm:$0xf0]  ;;  %v2687_v0 = vor.u32 %v3037_v53, %v2684_v54  ;;  %v2929_v13 = vld [vmem:[%s4518_s1 + $0x26c] sm:$0xf] }
  0x9d   :  { %1466 = vmatpush.bf16.msra.mxu1 %v2475_v6  ;;  %1517 = vmatpush.bf16.msrb.mxu0 %v2111_v8  ;;  %v2287_v60 = vor.u32 %v2937_v50, %v2284_v52  ;;  %v2543_v6 = vor.u32 %v3001_v62, %v2540_v63  ;;  %v2965_v8 = vld [vmem:[%s4518_s1 + $0x38c] sm:$0xf]  ;;  %v2255_v20 = vor.u32 %v2929_v13, %v2252_v14  ;;  %v2636_v29 = vld [vmem:[%s4518_s1 + $0x578] sm:$0xf0] }
  0x9e   :  { %v3029_v16 = vld [vmem:[%s4518_s1 + $0x58c] sm:$0xf]  ;;  %v2364_v39 = vld [vmem:[%s4518_s1 + $0x358] sm:$0xf0] }
  0x9f   :  { %1478 = vmatpush.bf16.msrb.mxu3 %v2619_v3  ;;  %v3033_v3 = vld [vmem:[%s4518_s1 + $0x5ac] sm:$0xf]  ;;  %v2620_v48 = vld [vmem:[%s4518_s1 + $0x558] sm:$0xf0] }
  0xa0   :  { %1504 = vmatpush.bf16.msrb.mxu2 %v1983_v2  ;;  %v2268_v2 = vld [vmem:[%s4518_s1 + $0x298] sm:$0xf0]  ;;  %v2671_v12 = vor.u32 %v3033_v3, %v2668_v4  ;;  %v2961_v19 = vld [vmem:[%s4518_s1 + $0x36c] sm:$0xf] }
  0xa1   :  { %1467 = vmatpush.bf16.msra.mxu1 %v2459_v22  ;;  %1518 = vmatpush.bf16.msrb.mxu0 %v2095_v23  ;;  %v2271_v9 = vor.u32 %v2933_v1, %v2268_v2  ;;  %v2993_v22 = vld [vmem:[%s4518_s1 + $0x46c] sm:$0xf]  ;;  %v2508_v23 = vld [vmem:[%s4518_s1 + $0x478] sm:$0xf0]  ;;  %v4306_v25 = vpop.f32.mrf.mxu1  ;;  %v2383_v33 = vor.u32 %v2961_v19, %v2380_v21 }
  0xa2   :  { %v2925_v26 = vld [vmem:[%s4518_s1 + $0x24c] sm:$0xf]  ;;  %v2511_v34 = vor.u32 %v2993_v22, %v2508_v23  ;;  %v2476_v59 = vld [vmem:[%s4518_s1 + $0x438] sm:$0xf0]  ;;  %v3054_v23 = vld [vmem:[%s4520_s3 + $0x30] sm:$0xff] }
  0xa3   :  { %1479 = vmatpush.bf16.msrb.mxu3 %v2603_v18  ;;  %v2527_v18 = vor.u32 %v2997_v10, %v2524_v11  ;;  %v3025_v28 = vld [vmem:[%s4518_s1 + $0x56c] sm:$0xf]  ;;  %v2204_v62 = vld [vmem:[%s4518_s1 + $0x218] sm:$0xf0] }
  0xa4   :  { %1505 = vmatpush.bf16.msrb.mxu2 %v1967_v15  ;;  %1468 = vmatmul.bf16.vlgmr.msra.gmra.mxu1 %v3605_v30  ;;  %v4286_v15 = vpop.f32.mrf.mxu0  ;;  %v2957_v36 = vld [vmem:[%s4518_s1 + $0x34c] sm:$0xf]  ;;  %v2639_v42 = vor.u32 %v3025_v28, %v2636_v29  ;;  %v2604_v1 = vld [vmem:[%s4518_s1 + $0x538] sm:$0xf0] }
  0xa5   :  { %1525 = vmatpush.bf16.msrb.mxu1 %v2319_v27  ;;  %1519 = vmatpush.bf16.msrb.mxu0 %v2079_v44  ;;  %v2236_v27 = vld [vmem:[%s4518_s1 + $0x258] sm:$0xf0]  ;;  %v3021_v47 = vld [vmem:[%s4518_s1 + $0x54c] sm:$0xf]  ;;  %v2367_v50 = vor.u32 %v2957_v36, %v2364_v39 }
  0xa6   :  { %v2220_v44 = vld [vmem:[%s4518_s1 + $0x238] sm:$0xf0]  ;;  %v2953_v53 = vld [vmem:[%s4518_s1 + $0x32c] sm:$0xf] }
  0xa7   :  { %1480 = vmatpush.bf16.msrb.mxu3 %v2587_v37  ;;  %v2239_v37 = vor.u32 %v2925_v26, %v2236_v27  ;;  %v2917_v61 = vld [vmem:[%s4518_s1 + $0x20c] sm:$0xf]  ;;  %v2716_v3 = vld [vmem:[%s4518_s1 + $0x618] sm:$0xf0] }
  0xa8   :  { %1506 = vmatpush.bf16.msrb.mxu2 %v1951_v32  ;;  %1520 = vmatmul.bf16.vlgmr.msrb.gmra.mxu0 %v3435_v7  ;;  %v2652_v7 = vld [vmem:[%s4518_s1 + $0x598] sm:$0xf0]  ;;  %v3017_v63 = vld [vmem:[%s4518_s1 + $0x52c] sm:$0xf] }
  0xa9   :  { %1526 = vmatpush.bf16.msrb.mxu1 %v2303_v43  ;;  %1564 = vmatpush.bf16.msra.mxu0 %v2703_v49  ;;  %v2655_v24 = vor.u32 %v3029_v16, %v2652_v7  ;;  %v4325_v32 = vpop.f32.mrf.mxu2  ;;  %v4330_v38 = vpop.f32.mrf.mxu3  ;;  %v2921_v43 = vld [vmem:[%s4518_s1 + $0x22c] sm:$0xf]  ;;  %v234_v49 = vperm.slane %v4323_v31, 0  ;;  %v2607_v11 = vor.u32 %v3017_v63, %v2604_v1  ;;  %v2460_v13 = vld [vmem:[%s4518_s1 + $0x418] sm:$0xf0] }
  0xaa   :  { %1481 = vmatmul.bf16.vlgmr.msrb.gmra.mxu3 %v3616_v35  ;;  %v2223_v54 = vor.u32 %v2921_v43, %v2220_v44  ;;  %v3045_v2 = vld [vmem:[%s4518_s1 + $0x60c] sm:$0xf]  ;;  %v3063_v29 = vld [vmem:[%s4520_s3 + $0x78] sm:$0xff] }
  0xab   :  { %1538 = vmatpush.bf16.msra.mxu3 %v2447_v40  ;;  %1507 = vmatmul.bf16.vlgmr.msrb.gmra.mxu2 %v3402_v55  ;;  %v2396_v55 = vld [vmem:[%s4518_s1 + $0x398] sm:$0xf0]  ;;  %v2989_v40 = vld [vmem:[%s4518_s1 + $0x44c] sm:$0xf]  ;;  %v2719_v14 = vor.u32 %v3045_v2, %v2716_v3  ;;  %v1236_v16 = vadd.f32 %v4286_v15, %v234_v49  ;;  %v3058_v49 = vld [vmem:[%s4520_s3 + $0x50] sm:$0xff] }
  0xac   :  { %1551 = vmatpush.bf16.msra.mxu2 %v2575_v41  ;;  %v2399_v17 = vor.u32 %v2965_v8, %v2396_v55  ;;  %v2492_v41 = vld [vmem:[%s4518_s1 + $0x458] sm:$0xf0]  ;;  %v1237_v46 = vpop.f32.mrf.mxu0  ;;  %v2207_v8 = vor.u32 %v2917_v61, %v2204_v62  ;;  %v3013_v7 = vld [vmem:[%s4518_s1 + $0x50c] sm:$0xf]  ;;  %v3070_v3 = vld [vmem:[%s4520_s3 + $0xb0] sm:$0xff] }
  0xad   :  { %1527 = vmatpush.bf16.msrb.mxu1 %v2287_v60  ;;  %1565 = vmatpush.bf16.msra.mxu0 %v2687_v0  ;;  %v2495_v52 = vor.u32 %v2989_v40, %v2492_v41  ;;  %v2623_v60 = vor.u32 %v3021_v47, %v2620_v48  ;;  %v1250_v0 = vpop.f32.mrf.mxu1  ;;  %v2332_v55 = vld [vmem:[%s4518_s1 + $0x318] sm:$0xf0]  ;;  %v1249_v21 = vadd.f32 %v4306_v25, %v1236_v16  ;;  %v3050_v40 = vld [vmem:[%s4520_s3 + $0x10] sm:$0xff]  ;;  %v3049_v43 = vld [vmem:[%s4520_s3 + $0x8] sm:$0xff] }
  0xae   :  { %v3048_v46 = vld [vmem:[%s4520_s3] sm:$0xff]  ;;  %v3071_v2 = vld [vmem:[%s4520_s3 + $0xb8] sm:$0xff] }
  0xaf   :  { %1539 = vmatpush.bf16.msra.mxu3 %v2431_v56  ;;  %v2348_v56 = vld [vmem:[%s4518_s1 + $0x338] sm:$0xf0] }
  0xb0   :  { %1552 = vmatpush.bf16.msra.mxu2 %v2559_v58  ;;  %v2985_v58 = vld [vmem:[%s4518_s1 + $0x42c] sm:$0xf] }
  0xb1   :  { %1528 = vmatpush.bf16.msrb.mxu1 %v2271_v9  ;;  %1566 = vmatpush.bf16.msra.mxu0 %v2671_v12  ;;  %v1263_v4 = vpop.f32.mrf.mxu2  ;;  %v2949_v9 = vld [vmem:[%s4518_s1 + $0x30c] sm:$0xf]  ;;  %v1276_v10 = vpop.f32.mrf.mxu3 }
  0xb2   :  { %v2981_v12 = vld [vmem:[%s4518_s1 + $0x40c] sm:$0xf] }
  0xb3   :  { %1540 = vmatpush.bf16.msra.mxu3 %v2415_v5  ;;  %v2351_v5 = vor.u32 %v2953_v53, %v2348_v56  ;;  %v2463_v19 = vor.u32 %v2981_v12, %v2460_v13  ;;  %v3056_v53 = vld [vmem:[%s4520_s3 + $0x40] sm:$0xff]  ;;  %v235_v56 = vperm.slane %v4323_v31, 1 }
  0xb4   :  { %1553 = vmatpush.bf16.msra.mxu2 %v2543_v6  ;;  %v2479_v6 = vor.u32 %v2985_v58, %v2476_v59  ;;  %v3068_v12 = vld [vmem:[%s4520_s3 + $0xa0] sm:$0xff] }
  0xb5   :  { %1529 = vmatpush.bf16.msrb.mxu1 %v2255_v20  ;;  %1567 = vmatpush.bf16.msra.mxu0 %v2655_v24  ;;  %v3055_v20 = vld [vmem:[%s4520_s3 + $0x38] sm:$0xff]  ;;  %v1262_v24 = vadd.f32 %v4325_v32, %v1249_v21 }
  0xb7   :  { %1541 = vmatpush.bf16.msra.mxu3 %v2399_v17  ;;  %v2588_v17 = vld [vmem:[%s4518_s1 + $0x518] sm:$0xf0]  ;;  %v1275_v25 = vadd.f32 %v4330_v38, %v1262_v24  ;;  %v3064_v24 = vld [vmem:[%s4520_s3 + $0x80] sm:$0xff] }
  0xb8   :  { %1554 = vmatpush.bf16.msra.mxu2 %v2527_v18  ;;  %v2335_v18 = vor.u32 %v2949_v9, %v2332_v55  ;;  %v2591_v15 = vor.u32 %v3013_v7, %v2588_v17  ;;  %v3067_v7 = vld [vmem:[%s4520_s3 + $0x98] sm:$0xff] }
  0xb9   :  { %1530 = vmatpush.bf16.msrb.mxu1 %v2239_v37  ;;  %1568 = vmatpush.bf16.msra.mxu0 %v2639_v42  ;;  %v1313_v22 = vpop.f32.mrf.mxu2  ;;  %v3061_v37 = vld [vmem:[%s4520_s3 + $0x68] sm:$0xff]  ;;  %v3060_v42 = vld [vmem:[%s4520_s3 + $0x60] sm:$0xff] }
  0xbb   :  { %1542 = vmatpush.bf16.msra.mxu3 %v2383_v33  ;;  %v3051_v33 = vld [vmem:[%s4520_s3 + $0x18] sm:$0xff] }
  0xbc   :  { %1555 = vmatpush.bf16.msra.mxu2 %v2511_v34 }
  0xbd   :  { %1531 = vmatpush.bf16.msrb.mxu1 %v2223_v54  ;;  %1569 = vmatpush.bf16.msra.mxu0 %v2623_v60 }
  0xbf   :  { %1543 = vmatpush.bf16.msra.mxu3 %v2367_v50 }
  0xc0   :  { %1556 = vmatpush.bf16.msra.mxu2 %v2495_v52  ;;  %v1287_v26 = vpop.f32.mrf.mxu0  ;;  %v3057_v52 = vld [vmem:[%s4520_s3 + $0x48] sm:$0xff] }
  0xc1   :  { %1532 = vmatpush.bf16.msrb.mxu1 %v2207_v8  ;;  %1570 = vmatpush.bf16.msra.mxu0 %v2607_v11  ;;  %v1315_v28 = vpop.f32.mrf.mxu2  ;;  %v1288_v32 = vadd.f32 %v1287_v26, %v1275_v25  ;;  %v3069_v11 = vld [vmem:[%s4520_s3 + $0xa8] sm:$0xff]  ;;  %v236_v26 = vperm.slane %v4323_v31, 2 }
  0xc2   :  { %v3079_v28 = vld [vmem:[%s4520_s3 + $0xf8] sm:$0xff] }
  0xc3   :  { %1544 = vmatpush.bf16.msra.mxu3 %v2351_v5  ;;  %v1300_v27 = vpop.f32.mrf.mxu1 }
  0xc4   :  { %1557 = vmatpush.bf16.msra.mxu2 %v2479_v6  ;;  %1533 = vmatmul.bf16.vlgmr.msrb.gmra.mxu1 %v3391_v51  ;;  %v3053_v51 = vld [vmem:[%s4520_s3 + $0x28] sm:$0xff] }
  0xc5   :  { %1584 = vmatpush.bf16.msra.mxu1 %v2719_v14  ;;  %1571 = vmatpush.bf16.msra.mxu0 %v2591_v15 }
  0xc7   :  { %1545 = vmatpush.bf16.msra.mxu3 %v2335_v18 }
  0xc8   :  { %1558 = vmatpush.bf16.msra.mxu2 %v2463_v19  ;;  %1572 = vmatmul.bf16.vlgmr.msra.gmra.mxu0 %v3616_v35  ;;  %v1301_v35 = vadd.f32 %v1300_v27, %v1288_v32  ;;  %v1289_v36 = vpop.f32.mrf.mxu0  ;;  %v3066_v19 = vld [vmem:[%s4520_s3 + $0x90] sm:$0xff] }
  0xc9   :  { %1871 = vmatpush.bf16.msrb.mxu1 %v3063_v29  ;;  %v1326_v34 = vpop.f32.mrf.mxu3  ;;  %1897 = vmatpush.bf16.msrb.mxu0 %v3079_v28  ;;  %v3076_v36 = vld [vmem:[%s4520_s3 + $0xe0] sm:$0xff] }
  0xca   :  { %1546 = vmatmul.bf16.vlgmr.msra.gmra.mxu3 %v3404_v57  ;;  %v3052_v57 = vld [vmem:[%s4520_s3 + $0x20] sm:$0xff]  ;;  %v1314_v39 = vadd.f32 %v1313_v22, %v1301_v35  ;;  %v1327_v59 = vadd.f32 %v1326_v34, %v235_v56  ;;  %v3077_v35 = vld [vmem:[%s4520_s3 + $0xe8] sm:$0xff]  ;;  %v237_v56 = vperm.slane %v4323_v31, 3 }
  0xcb   :  { %1858 = vmatpush.bf16.msrb.mxu3 %v3055_v20  ;;  %1559 = vmatmul.bf16.vlgmr.msra.gmra.mxu2 %v3605_v30  ;;  %v3062_v30 = vld [vmem:[%s4520_s3 + $0x70] sm:$0xff]  ;;  %v1302_v38 = vpop.f32.mrf.mxu1 }
  0xcc   :  { %3082 = vtanh.f32 %v1314_v39  ;;  %1884 = vmatpush.bf16.msrb.mxu2 %v3071_v2 }
  0xcd   :  { %1872 = vmatpush.bf16.msrb.mxu1 %v3062_v30 }
  0xce   :  { %v1339_v41 = vpop.f32.mrf.mxu2 }
  0xcf   :  { %1859 = vmatpush.bf16.msrb.mxu3 %v3054_v23  ;;  %v1340_v63 = vadd.f32 %v1339_v41, %v1327_v59  ;;  %v3065_v23 = vld [vmem:[%s4520_s3 + $0x88] sm:$0xff] }
  0xd0   :  { %1885 = vmatpush.bf16.msrb.mxu2 %v3070_v3 }
  0xd1   :  { %1873 = vmatpush.bf16.msrb.mxu1 %v3061_v37  ;;  %v1328_v44 = vpop.f32.mrf.mxu3 }
  0xd2   :  { %v3083_v48 = vpop.eup %3082 }
  0xd3   :  { %1860 = vmatpush.bf16.msrb.mxu3 %v3053_v51  ;;  %v1594_v50 = vpack.c.bf16 %v3083_v48, %v3083_v48 }
  0xd4   :  { %2723 = vmatmul.msk.bf16.vlgmr.msra.gmra.mxu1 %vm1222_vm0, %v3514_v45  ;;  %v3059_v45 = vld [vmem:[%s4520_s3 + $0x58] sm:$0xff]  ;;  %1886 = vmatpush.bf16.msrb.mxu2 %v3069_v11 }
  0xd5   :  { %1874 = vmatpush.bf16.msrb.mxu1 %v3060_v42  ;;  %v3075_v42 = vld [vmem:[%s4520_s3 + $0xd8] sm:$0xff] }
  0xd6   :  { %v1341_v47 = vpop.f32.mrf.mxu2 }
  0xd7   :  { %1861 = vmatpush.bf16.msrb.mxu3 %v3052_v57  ;;  %v3078_v57 = vld [vmem:[%s4520_s3 + $0xf0] sm:$0xff] }
  0xd8   :  { %1887 = vmatpush.bf16.msrb.mxu2 %v3068_v12  ;;  %1898 = vmatpush.bf16.msrb.mxu0 %v3078_v57 }
  0xd9   :  { %1875 = vmatpush.bf16.msrb.mxu1 %v3059_v45 }
  0xdb   :  { %1862 = vmatpush.bf16.msrb.mxu3 %v3051_v33 }
  0xdc   :  { %1888 = vmatpush.bf16.msrb.mxu2 %v3067_v7  ;;  %1899 = vmatpush.bf16.msrb.mxu0 %v3077_v35 }
  0xdd   :  { %1876 = vmatpush.bf16.msrb.mxu1 %v3058_v49  ;;  %v3073_v49 = vld [vmem:[%s4520_s3 + $0xc8] sm:$0xff] }
  0xdf   :  { %1863 = vmatpush.bf16.msrb.mxu3 %v3050_v40 }
  0xe0   :  { %1889 = vmatpush.bf16.msrb.mxu2 %v3066_v19  ;;  %1900 = vmatpush.bf16.msrb.mxu0 %v3076_v36 }
  0xe1   :  { %1877 = vmatpush.bf16.msrb.mxu1 %v3057_v52  ;;  %v1352_v54 = vpop.f32.mrf.mxu0 }
  0xe2   :  { %v1353_v1 = vadd.f32 %v1352_v54, %v1340_v63  ;;  %v3072_v54 = vld [vmem:[%s4520_s3 + $0xc0] sm:$0xff] }
  0xe3   :  { %1864 = vmatpush.bf16.msrb.mxu3 %v3049_v43  ;;  %v1365_v58 = vpop.f32.mrf.mxu1 }
  0xe4   :  { %v1366_v5 = vadd.f32 %v1365_v58, %v1353_v1  ;;  %1890 = vmatpush.bf16.msrb.mxu2 %v3065_v23  ;;  %1901 = vmatpush.bf16.msrb.mxu0 %v3075_v42 }
  0xe5   :  { %1878 = vmatpush.bf16.msrb.mxu1 %v3056_v53 }
  0xe7   :  { %1865 = vmatpush.bf16.msrb.mxu3 %v3048_v46  ;;  %v3074_v46 = vld [vmem:[%s4520_s3 + $0xd0] sm:$0xff] }
  0xe8   :  { %1891 = vmatpush.bf16.msrb.mxu2 %v3064_v24  ;;  %1902 = vmatpush.bf16.msrb.mxu0 %v3074_v46 }
  0xe9   :  { %v1378_v60 = vpop.f32.mrf.mxu3  ;;  %v1354_v61 = vpop.f32.mrf.mxu0 }
  0xea   :  { %1866 = vmatmul.bf16.vlgmr.msrb.gmra.mxu3 %v1594_v50  ;;  %v1379_v8 = vadd.f32 %v1378_v60, %v1366_v5 }
  0xeb   :  { %v1367_v0 = vpop.f32.mrf.mxu1 }
  0xec   :  { %1903 = vmatpush.bf16.msrb.mxu0 %v3073_v49 }
  0xee   :  { %v1391_v62 = vpop.f32.mrf.mxu2 }
  0xef   :  { %v1392_v9 = vadd.f32 %v1391_v62, %v1379_v8 }
  0xf0   :  { %1904 = vmatpush.bf16.msrb.mxu0 %v3072_v54 }
  0xf1   :  { %v1380_v4 = vpop.f32.mrf.mxu3 }
  0xf6   :  { %v1393_v6 = vpop.f32.mrf.mxu2 }
  0xf9   :  { %v1404_v55 = vpop.f32.mrf.mxu3 }
  0xfa   :  { %v1405_v10 = vadd.f32 %v1404_v55, %v1392_v9 }
  0xfc   :  { %3084 = vtanh.f32 %v1405_v10 }
 0x101   :  { %v1406_v13 = vpop.f32.mrf.mxu3  ;;  %v1443_v14 = vpop.f32.mrf.mxu0 }
 0x102   :  { %v3085_v16 = vpop.eup %3084 }
 0x103   :  { %v1595_v17 = vpack.c.bf16 %v3085_v16, %v3085_v16  ;;  %v1417_v18 = vpop.f32.mrf.mxu1 }
 0x104   :  { %v1418_v29 = vadd.f32 %v1417_v18, %v236_v26 }
 0x105   :  { %1879 = vmatmul.bf16.vlgmr.msrb.gmra.mxu1 %v1595_v17 }
 0x109   :  { %v1445_v15 = vpop.f32.mrf.mxu0 }
 0x10b   :  { %v1419_v22 = vpop.f32.mrf.mxu1 }
 0x10d   :  { %v1430_v20 = vpop.f32.mrf.mxu3 }
 0x10e   :  { %v1456_v21 = vpop.f32.mrf.mxu2  ;;  %v1431_v30 = vadd.f32 %v1430_v20, %v1418_v29 }
 0x110   :  { %v1444_v34 = vadd.f32 %v1443_v14, %v1431_v30  ;;  %v3081_v14 = vld [vmem:[%s4521_s4] ss:$0 sm:$0xff]  ;;  %s3120_s4 = smov [#allocation2]  }
 0x111   :  { %v1495_v25 = vpop.f32.mrf.mxu0  ;;  %s1925_s29 = sshll.u32 %s3120_s4, 4  ;;  %s1926_s29 = int_to_ptr.vmem [resolvable:$true] %s1925_s29 }
 0x112   :  { %v1457_v37 = vadd.f32 %v1456_v21, %v1444_v34 }
 0x115   :  { %v1432_v51 = vpop.f32.mrf.mxu3 }
 0x116   :  { %v1458_v27 = vpop.f32.mrf.mxu2 }
 0x119   :  { %v1497_v32 = vpop.f32.mrf.mxu0 }
 0x121   :  { %v1469_v33 = vpop.f32.mrf.mxu1 }
 0x122   :  { %v1470_v39 = vadd.f32 %v1469_v33, %v1457_v37 }
 0x125   :  { %v1521_v38 = vpop.f32.mrf.mxu0 }
 0x129   :  { %v1471_v40 = vpop.f32.mrf.mxu1 }
 0x12d   :  { %v1482_v41 = vpop.f32.mrf.mxu3  ;;  %v1523_v47 = vpop.f32.mrf.mxu0 }
 0x12e   :  { %v1483_v43 = vadd.f32 %v1482_v41, %v1470_v39  ;;  %v1508_v45 = vpop.f32.mrf.mxu2 }
 0x12f   :  { %v1509_v58 = vadd.f32 %v1508_v45, %v237_v56 }
 0x130   :  { %v1496_v44 = vadd.f32 %v1495_v25, %v1483_v43 }
 0x131   :  { %v1522_v60 = vadd.f32 %v1521_v38, %v1509_v58 }
 0x132   :  { %3086 = vtanh.f32 %v1496_v44 }
 0x135   :  { %v1484_v48 = vpop.f32.mrf.mxu3 }
 0x136   :  { %v1510_v50 = vpop.f32.mrf.mxu2 }
 0x138   :  { %v3087_v52 = vpop.eup %3086 }
 0x139   :  { %v1596_v53 = vpack.c.bf16 %v3087_v52, %v3087_v52 }
 0x13b   :  { %1892 = vmatmul.bf16.vlgmr.msrb.gmra.mxu2 %v1596_v53 }
 0x141   :  { %v1534_v59 = vpop.f32.mrf.mxu1 }
 0x142   :  { %v1535_v62 = vadd.f32 %v1534_v59, %v1522_v60 }
 0x145   :  { %v1573_v61 = vpop.f32.mrf.mxu0 }
 0x149   :  { %v1536_v63 = vpop.f32.mrf.mxu1 }
 0x14d   :  { %v1547_v0 = vpop.f32.mrf.mxu3  ;;  %v1575_v4 = vpop.f32.mrf.mxu0 }
 0x14e   :  { %v1548_v1 = vadd.f32 %v1547_v0, %v1535_v62  ;;  %v1560_v2 = vpop.f32.mrf.mxu2 }
 0x150   :  { %v1561_v3 = vadd.f32 %v1560_v2, %v1548_v1 }
 0x151   :  { %v1586_v6 = vpop.f32.mrf.mxu1 }
 0x152   :  { %v1574_v5 = vadd.f32 %v1573_v61, %v1561_v3 }
 0x154   :  { %v1587_v8 = vadd.f32 %v1586_v6, %v1574_v5 }
 0x155   :  { %v1549_v9 = vpop.f32.mrf.mxu3 }
 0x156   :  { %v1562_v55 = vpop.f32.mrf.mxu2  ;;  %3088 = vtanh.f32 %v1587_v8 }
 0x159   :  { %v1588_v10 = vpop.f32.mrf.mxu1 }
 0x15c   :  { %v3089_v11 = vpop.eup %3088 }
 0x15d   :  { %v1597_v31 = vpack.c.bf16 %v3089_v11, %v3089_v11 }
 0x15f   :  { %1905 = vmatmul.bf16.vlgmr.msrb.gmra.mxu0 %v1597_v31 }
 0x16d   :  { %v1867_v12 = vpop.f32.mrf.mxu3 }
 0x16e   :  { %v1868_v16 = vadd.f32 %v3081_v14, %v1867_v12 }
 0x175   :  { %v1869_v13 = vpop.f32.mrf.mxu3 }
 0x182   :  { %v1880_v7 = vpop.f32.mrf.mxu1 }
 0x183   :  { %v1881_v17 = vadd.f32 %v1880_v7, %v1868_v16 }
 0x18a   :  { %v1882_v18 = vpop.f32.mrf.mxu1 }
 0x1be   :  { %v1893_v19 = vpop.f32.mrf.mxu2 }
 0x1bf   :  { %v1894_v15 = vadd.f32 %v1893_v19, %v1881_v17 }
 0x1c6   :  { %v1895_v20 = vpop.f32.mrf.mxu2 }
 0x1dc   :  { %v1906_v21 = vpop.f32.mrf.mxu0 }
 0x1dd   :  { %v1907_v22 = vadd.f32 %v1906_v21, %v1894_v15 }
 0x1df   :  { %1910 = vmax.xlane.f32.xlu0 %v1907_v22 }
 0x1e4   :  { %v1908_v23 = vpop.f32.mrf.mxu0 }
 0x252   :  { %v1911_v24 = vpop.xlane.xlu0 %1910 }
 0x253   :  { %v1912_v51 = vsub.f32 %v1907_v22, %v1911_v24 }
 0x255   :  { %v1913_v25 = vmul.f32 1.442695, %v1912_v51 }
 0x257   :  { %3090 = vpow2.f32 %v1913_v25 }
 0x25d   :  { %v3091_v26 = vpop.eup %3090 }
 0x25e   :  { %1915 = vadd.xlane.f32.xlu0 %v3091_v26 }
 0x2d1   :  { %v1916_v27 = vpop.xlane.xlu0 %1915 }
 0x2d2   :  { %3092 = vrcp.f32 %v1916_v27 }
 0x2d8   :  { %v3093_v28 = vpop.eup %3092 }
 0x2d9   :  { %v1918_v29 = vmul.f32 %v3093_v28, %v3091_v26 }
 0x2db   :  { %1919 = vst [vmem:[#allocation2] sm:$0xff] %v1918_v29 }
 0x2dc   :  { %1930 = dma.vmem_to_hbm [thread:$0]  %s1926_s29, 128, %s1928_s7, [#allocation3]  }
 0x2dd   :  { %3118 = dma.done.wait [#allocation3], 128  }
 0x2de   :  { %3119 = vsyncadd [#allocation3], 4294967168 }
 0x2df   :  { %1935 = vsyncpa [#allocation3], 1 }

</bundles_post_ra>
